<compile_context>
chip_gen: v6e
topology: v6e:2x2x1
jax: 0.10.0
libtpu: 0.0.40
codegen_flags: <defaults>
</compile_context>

<pallas_src>
import functools

import jax
import jax.numpy as jnp
from jax.experimental import pallas as pl
from jax.experimental.pallas import tpu as pltpu


# --------------------------- fused encoder kernel ---------------------------

def _encoder_kernel(x_ref,
                    wd_ref, bd_ref, w1_ref, b1_ref, w2_ref, b2_ref,
                    wf_ref, bf_ref, wdn_ref, bdn_ref,
                    *out_and_scratch,
                    kernel_size, dilation, strides, n_blocks, time_sizes):
    """Whole AdvancedEncoder for one batch element (grid axis = batch).

    Internal compute layout is [T, C] (time on sublanes, channels on lanes).
    `xpad` is a zero-padded halo scratch of shape [T0 + 2*P, C]; every 'same'
    conv writes its input into rows [P, P+T) and reads K statically shifted
    [T, C] taps, each feeding one MXU matmul.
    """
    *out_refs, xpad = out_and_scratch
    K = kernel_size
    P = max(((K - 1) * dilation) // 2, (K - 1) // 2)   # halo rows on each side
    p1 = (K - 1) // 2                                  # halo of dilation-1 convs
    n_layers = len(strides)
    C = x_ref.shape[1]
    cdt = xpad.dtype                                   # matmul-input dtype

    # Zero the halo scratch once; afterwards only rows [P, P+T) are written,
    # so the halo rows stay zero (re-zeroed below when T shrinks per layer).
    xpad[...] = jnp.zeros_like(xpad)

    def load_taps(T, inp, pad, dil):
        """Write the conv input into the halo scratch, return its K taps."""
        xpad[pl.ds(P, T), :] = inp.astype(cdt)
        return [xpad[pl.ds(P - pad + k * dil, T), :] for k in range(K)]

    def conv_block(T, x, l, i):
        """AdvancedConvBlock: dilated conv -> tanh*sigmoid gate -> 1x1 -> + x."""
        bi = l * n_blocks + i
        # conv_dilated ('same')
        taps = load_taps(T, x, P, dilation)
        h = jnp.zeros((T, C), jnp.float32)
        for k in range(K):
            h = h + jnp.dot(taps[k], wd_ref[bi * K + k],
                            preferred_element_type=jnp.float32)
        h = h + bd_ref[bi]
        # conv1_1 / conv1_2 share input h: write the halo once, read taps once.
        taps = load_taps(T, h, p1, 1)
        a1 = jnp.zeros((T, C), jnp.float32)
        a2 = jnp.zeros((T, C), jnp.float32)
        for k in range(K):
            a1 = a1 + jnp.dot(taps[k], w1_ref[bi * K + k],
                              preferred_element_type=jnp.float32)
            a2 = a2 + jnp.dot(taps[k], w2_ref[bi * K + k],
                              preferred_element_type=jnp.float32)
        flow = jnp.tanh(a1 + b1_ref[bi])
        gate = jax.nn.sigmoid(a2 + b2_ref[bi])
        res = (flow * gate).astype(cdt)
        res = jnp.dot(res, wf_ref[bi], preferred_element_type=jnp.float32)
        res = res + bf_ref[bi]
        return res + x                                  # residual on block input

    # NCT input block [C, T0] -> [T0, C]; residual path is carried in f32.
    x = jnp.transpose(x_ref[0], (1, 0)).astype(jnp.float32)

    for l in range(n_layers):
        T = time_sizes[l]
        if l > 0 and P > 0:
            # Time axis shrank: re-zero the P rows just past the new end so
            # trailing halo reads stay zero (leading halo is never written).
            xpad[pl.ds(P + T, P), :] = jnp.zeros((P, C), cdt)
        for i in range(n_blocks):
            x = conv_block(T, x, l, i)
        # Per-layer output x_res stored NCT ([C, T]) -> lane dim is T.
        out_refs[l][0] = jnp.transpose(x, (1, 0)).astype(out_refs[l].dtype)
        # Fused downsample: 1x1 conv, stride s, VALID padding, implemented as
        # a sublane-strided read of the scratch followed by one MXU matmul.
        s = strides[l]
        To = time_sizes[l + 1]
        xpad[pl.ds(P, T), :] = x.astype(cdt)
        idx = pl.ds(P, To) if s == 1 else pl.ds(P, To, stride=s)
        xs = xpad[idx, :]
        x = jnp.dot(xs, wdn_ref[l], preferred_element_type=jnp.float32)
        x = x + bdn_ref[l]

    out_refs[n_layers][0] = jnp.transpose(x, (1, 0)).astype(out_refs[n_layers].dtype)


# ------------------------------- wrappers ------------------------------------

def prepare_encoder_params(params, compute_dtype=jnp.float32):
    """Stack & transpose all weights ONCE into the layouts the fused kernel wants.

    PyTorch Conv1d weights are [C_out, C_in, K]; the kernel wants per-tap
    [C_in, C_out] matrices.  Per-block tensors are stacked over (layer, block)
    and flattened on the leading axis so every in-kernel index is static.
    Use compute_dtype=jnp.bfloat16 on v6e/v7x (accumulation stays f32).
    """
    layers = params["layers"]
    L, NB = len(layers), len(layers[0])
    C = layers[0][0]["wd"].shape[0]
    K = layers[0][0]["wd"].shape[2]
    t3 = lambda w: jnp.transpose(w, (2, 1, 0))            # -> [K, Cin, Cout]

    def stack_blocks(fn):
        return jnp.stack([fn(b) for blocks in layers for b in blocks])

    prep = dict(
        wd=stack_blocks(lambda b: t3(b["wd"])).reshape(L * NB * K, C, C),
        bd=stack_blocks(lambda b: b["bd"][None, :]),
        w1=stack_blocks(lambda b: t3(b["w1"])).reshape(L * NB * K, C, C),
        b1=stack_blocks(lambda b: b["b1"][None, :]),
        w2=stack_blocks(lambda b: t3(b["w2"])).reshape(L * NB * K, C, C),
        b2=stack_blocks(lambda b: b["b2"][None, :]),
        wf=stack_blocks(lambda b: b["wf"][:, :, 0].T),
        bf=stack_blocks(lambda b: b["bf"][None, :]),
        wdn=jnp.stack([w[:, :, 0].T for w, _ in params["downs"]]),
        bdn=jnp.stack([b[None, :] for _, b in params["downs"]]),
    )
    return {k: v.astype(compute_dtype) for k, v in prep.items()}


def encoder_forward_pallas(x_nct, prep, *, strides, dilation, n_blocks,
                           kernel_size):
    """AdvancedEncoder.forward: [x_res per layer ..., final downsampled x], NCT."""
    B, C, T0 = x_nct.shape
    L = len(strides)
    NB, K = n_blocks, kernel_size
    assert prep["wd"].shape[0] == L * NB * K
    cdt = prep["wd"].dtype
    P = max(((K - 1) * dilation) // 2, (K - 1) // 2)
    # NOTE: matches PyTorch padding='same' only for odd kernel sizes (K=3 here).

    time_sizes = [T0]
    for s in strides:
        time_sizes.append((time_sizes[-1] - 1) // s + 1)   # k=1, stride s, VALID

    kernel = functools.partial(
        _encoder_kernel, kernel_size=K, dilation=dilation,
        strides=tuple(strides), n_blocks=NB, time_sizes=tuple(time_sizes))

    def full_spec(arr):
        zeros = (0,) * arr.ndim
        return pl.BlockSpec(arr.shape, lambda b: zeros)

    w_names = ("wd", "bd", "w1", "b1", "w2", "b2", "wf", "bf", "wdn", "bdn")
    in_specs = [pl.BlockSpec((1, C, T0), lambda b: (b, 0, 0))]
    in_specs += [full_spec(prep[k]) for k in w_names]

    out_shape = tuple(jax.ShapeDtypeStruct((B, C, t), x_nct.dtype)
                      for t in time_sizes)
    out_specs = tuple(pl.BlockSpec((1, C, t), lambda b: (b, 0, 0))
                      for t in time_sizes)

    # Advisory cost estimate so XLA can schedule/overlap around the fused call.
    flops = trans = 0
    for l in range(L):
        t_l, t_o = time_sizes[l], time_sizes[l + 1]
        flops += NB * (3 * K + 1) * 2 * t_l * C * C + 2 * t_o * C * C
        trans += NB * 2 * t_l * C
    flops *= B
    trans *= B
    weight_bytes = sum(int(v.size) * v.dtype.itemsize for v in prep.values())
    io_bytes = x_nct.dtype.itemsize * B * C * (T0 + sum(time_sizes))
    cost = pl.CostEstimate(flops=int(flops), transcendentals=int(trans),
                           bytes_accessed=int(weight_bytes + io_bytes))

    # Explicit VMEM budget (keeps headroom on v7x's 64 MiB).
    act_bytes = ((T0 + 2 * P) * C * cdt.itemsize            # halo scratch
                 + 8 * T0 * C * 4                            # live f32 values
                 + 4 * C * (T0 + sum(time_sizes)) * x_nct.dtype.itemsize)
    vmem_limit = int(min(max(4 * (weight_bytes + act_bytes), 16 << 20), 48 << 20))

    outs = pl.pallas_call(
        kernel,
        out_shape=out_shape,
        grid=(B,),
        in_specs=in_specs,
        out_specs=out_specs,
        scratch_shapes=[pltpu.VMEM((T0 + 2 * P, C), cdt)],
        compiler_params=pltpu.CompilerParams(
            dimension_semantics=("parallel",),
            vmem_limit_bytes=vmem_limit),
        cost_estimate=cost,
    )(x_nct, *(prep[k] for k in w_names))
    return list(outs)


# --------------------------- pure-JAX reference ------------------------------

def conv1d_ref(x_nct, w, b, stride=1, dilation=1, same=True):
    y = jax.lax.conv_general_dilated(
        x_nct, w, window_strides=(stride,),
        padding="SAME" if same else "VALID",
        rhs_dilation=(dilation,),
        dimension_numbers=("NCH", "OIH", "NCH"),
        precision=jax.lax.Precision.HIGHEST)
    return y + b[None, :, None]


def block_ref(x, blk, dilation):
    h = conv1d_ref(x, blk["wd"], blk["bd"], dilation=dilation)
    flow = jnp.tanh(conv1d_ref(h, blk["w1"], blk["b1"]))
    gate = jax.nn.sigmoid(conv1d_ref(h, blk["w2"], blk["b2"]))
    res = conv1d_ref(flow * gate, blk["wf"], blk["bf"])
    return res + x


def encoder_forward_ref(x, params, strides, dilation):
    outputs = []
    for blocks, (wdn, bdn), s in zip(params["layers"], params["downs"], strides):
        for blk in blocks:
            x = block_ref(x, blk, dilation)
        outputs.append(x)
        x = conv1d_ref(x, wdn, bdn, stride=s, same=False)
    outputs.append(x)
    return outputs


# ------------------------------ params init ----------------------------------

def init_params(key, n_filters, kernel_size, n_blocks_per_layer, strides):
    def conv_init(k, c_out, c_in, ks):
        bound = 1.0 / float(c_in * ks) ** 0.5
        kw, kb = jax.random.split(k)
        w = jax.random.uniform(kw, (c_out, c_in, ks), jnp.float32, -bound, bound)
        b = jax.random.uniform(kb, (c_out,), jnp.float32, -bound, bound)
        return w, b

    n_layers = len(strides)
    keys = iter(jax.random.split(key, n_layers * (n_blocks_per_layer * 4 + 1)))
    layers, downs = [], []
    for _ in range(n_layers):
        blocks = []
        for _ in range(n_blocks_per_layer):
            wd, bd = conv_init(next(keys), n_filters, n_filters, kernel_size)
            w1, b1 = conv_init(next(keys), n_filters, n_filters, kernel_size)
            w2, b2 = conv_init(next(keys), n_filters, n_filters, kernel_size)
            wf, bf = conv_init(next(keys), n_filters, n_filters, 1)
            blocks.append(dict(wd=wd, bd=bd, w1=w1, b1=b1, w2=w2, b2=b2,
                               wf=wf, bf=bf))
        layers.append(blocks)
        wdn, bdn = conv_init(next(keys), n_filters, n_filters, 1)
        downs.append((wdn, bdn))
    return dict(layers=layers, downs=downs)


# ---------------------------------- main --------------------------------------

if __name__ == "__main__":
    # Small config consistent with the module's constructor arguments.
    B, n_filters, T = 2, 32, 16
    n_blocks_per_layer = 2
    kernel_size = 3
    dilation = 1
    strides = (2, 2)

    key = jax.random.PRNGKey(0)
    kx, kp = jax.random.split(key)
    x = jax.random.normal(kx, (B, n_filters, T), jnp.float32)   # NCT
    params = init_params(kp, n_filters, kernel_size, n_blocks_per_layer, strides)

    # Weight stacking / relayout happens once, outside the forward.
    prep = prepare_encoder_params(params, compute_dtype=jnp.float32)

    fwd = jax.jit(functools.partial(
        encoder_forward_pallas, strides=strides, dilation=dilation,
        n_blocks=n_blocks_per_layer, kernel_size=kernel_size))
    outs = jax.block_until_ready(fwd(x, prep))

    refs = encoder_forward_ref(x, params, strides, dilation)
    assert len(outs) == len(strides) + 1
    for o, r in zip(outs, refs):
        assert o.shape == r.shape, (o.shape, r.shape)
        assert jnp.allclose(o, r, atol=1e-4, rtol=1e-4), \
            float(jnp.max(jnp.abs(o - r)))

    print("KERNEL_OK")
</pallas_src>

<mosaic_0001>
module attributes {stable_mosaic.version = 11 : i64} {
  func.func @_encoder_kernel(%arg0: i32, %arg1: memref<1x32x16xf32, #tpu.memory_space<vmem>>, %arg2: memref<12x32x32xf32, #tpu.memory_space<vmem>>, %arg3: memref<4x1x32xf32, #tpu.memory_space<vmem>>, %arg4: memref<12x32x32xf32, #tpu.memory_space<vmem>>, %arg5: memref<4x1x32xf32, #tpu.memory_space<vmem>>, %arg6: memref<12x32x32xf32, #tpu.memory_space<vmem>>, %arg7: memref<4x1x32xf32, #tpu.memory_space<vmem>>, %arg8: memref<4x32x32xf32, #tpu.memory_space<vmem>>, %arg9: memref<4x1x32xf32, #tpu.memory_space<vmem>>, %arg10: memref<2x32x32xf32, #tpu.memory_space<vmem>>, %arg11: memref<2x1x32xf32, #tpu.memory_space<vmem>>, %arg12: memref<1x32x16xf32, #tpu.memory_space<vmem>>, %arg13: memref<1x32x8xf32, #tpu.memory_space<vmem>>, %arg14: memref<1x32x4xf32, #tpu.memory_space<vmem>>, %arg15: memref<18x32xf32, #tpu.memory_space<vmem>>) attributes {dimension_semantics = [#tpu.dimension_semantics<parallel>], iteration_bounds = array<i64: 2>, scalar_prefetch = 0 : i64, scratch_operands = 1 : i64, tpu.core_type = #tpu.core_type<tc>, window_params = [{transform_indices = @transform_0, window_bounds = array<i64: 1, 32, 16>}, {pipeline_mode = #tpu.pipeline_mode<synchronous>, transform_indices = @transform_1, window_bounds = array<i64: 12, 32, 32>}, {pipeline_mode = #tpu.pipeline_mode<synchronous>, transform_indices = @transform_2, window_bounds = array<i64: 4, 1, 32>}, {pipeline_mode = #tpu.pipeline_mode<synchronous>, transform_indices = @transform_3, window_bounds = array<i64: 12, 32, 32>}, {pipeline_mode = #tpu.pipeline_mode<synchronous>, transform_indices = @transform_4, window_bounds = array<i64: 4, 1, 32>}, {pipeline_mode = #tpu.pipeline_mode<synchronous>, transform_indices = @transform_5, window_bounds = array<i64: 12, 32, 32>}, {pipeline_mode = #tpu.pipeline_mode<synchronous>, transform_indices = @transform_6, window_bounds = array<i64: 4, 1, 32>}, {pipeline_mode = #tpu.pipeline_mode<synchronous>, transform_indices = @transform_7, window_bounds = array<i64: 4, 32, 32>}, {pipeline_mode = #tpu.pipeline_mode<synchronous>, transform_indices = @transform_8, window_bounds = array<i64: 4, 1, 32>}, {pipeline_mode = #tpu.pipeline_mode<synchronous>, transform_indices = @transform_9, window_bounds = array<i64: 2, 32, 32>}, {pipeline_mode = #tpu.pipeline_mode<synchronous>, transform_indices = @transform_10, window_bounds = array<i64: 2, 1, 32>}, {transform_indices = @transform_11, window_bounds = array<i64: 1, 32, 16>}, {transform_indices = @transform_12, window_bounds = array<i64: 1, 32, 8>}, {transform_indices = @transform_13, window_bounds = array<i64: 1, 32, 4>}]} {
    %cst = arith.constant 0.000000e+00 : f32
    %0 = vector.broadcast %cst : f32 to vector<18x32xf32>
    %c0 = arith.constant 0 : index
    %c0_0 = arith.constant 0 : index
    %1 = vector.load %arg15[%c0, %c0_0] : memref<18x32xf32, #tpu.memory_space<vmem>>, vector<18x32xf32>
    tpu.vector_store %arg15[%c0, %c0_0], %0 {strides = array<i32>} : memref<18x32xf32, #tpu.memory_space<vmem>>, vector<18x32xf32>,
    %c0_1 = arith.constant 0 : index
    %c0_2 = arith.constant 0 : index
    %c0_3 = arith.constant 0 : index
    %2 = vector.load %arg1[%c0_1, %c0_2, %c0_3] : memref<1x32x16xf32, #tpu.memory_space<vmem>>, vector<1x32x16xf32>
    %3 = vector.shape_cast %2 : vector<1x32x16xf32> to vector<32x16xf32>
    %4 = tpu.transpose %3, [1, 0] : vector<32x16xf32> -> vector<16x32xf32>
    %c1 = arith.constant 1 : index
    %c0_4 = arith.constant 0 : index
    %5 = vector.load %arg15[%c1, %c0_4] : memref<18x32xf32, #tpu.memory_space<vmem>>, vector<16x32xf32>
    tpu.vector_store %arg15[%c1, %c0_4], %4 {strides = array<i32>} : memref<18x32xf32, #tpu.memory_space<vmem>>, vector<16x32xf32>,
    %c0_5 = arith.constant 0 : index
    %c0_6 = arith.constant 0 : index
    %6 = vector.load %arg15[%c0_5, %c0_6] : memref<18x32xf32, #tpu.memory_space<vmem>>, vector<16x32xf32>
    %c1_7 = arith.constant 1 : index
    %c0_8 = arith.constant 0 : index
    %7 = vector.load %arg15[%c1_7, %c0_8] : memref<18x32xf32, #tpu.memory_space<vmem>>, vector<16x32xf32>
    %c2 = arith.constant 2 : index
    %c0_9 = arith.constant 0 : index
    %8 = vector.load %arg15[%c2, %c0_9] : memref<18x32xf32, #tpu.memory_space<vmem>>, vector<16x32xf32>
    %cst_10 = arith.constant 0.000000e+00 : f32
    %9 = vector.broadcast %cst_10 : f32 to vector<16x32xf32>
    %c0_11 = arith.constant 0 : index
    %c0_12 = arith.constant 0 : index
    %c0_13 = arith.constant 0 : index
    %10 = vector.load %arg2[%c0_11, %c0_12, %c0_13] : memref<12x32x32xf32, #tpu.memory_space<vmem>>, vector<1x32x32xf32>
    %11 = vector.shape_cast %10 : vector<1x32x32xf32> to vector<32x32xf32>
    %cst_14 = arith.constant dense<0.000000e+00> : vector<16x32xf32>
    %12 = tpu.matmul %6, %11, %cst_14 {dimension_numbers = #tpu.dot_dimension_numbers<[1], [0], [0], [1], [0, 0, 1, 1], [], []>} : vector<16x32xf32>, vector<32x32xf32>, vector<16x32xf32> -> vector<16x32xf32>
    %13 = arith.addf %9, %12 : vector<16x32xf32>
    %c1_15 = arith.constant 1 : index
    %c0_16 = arith.constant 0 : index
    %c0_17 = arith.constant 0 : index
    %14 = vector.load %arg2[%c1_15, %c0_16, %c0_17] : memref<12x32x32xf32, #tpu.memory_space<vmem>>, vector<1x32x32xf32>
    %15 = vector.shape_cast %14 : vector<1x32x32xf32> to vector<32x32xf32>
    %cst_18 = arith.constant dense<0.000000e+00> : vector<16x32xf32>
    %16 = tpu.matmul %7, %15, %cst_18 {dimension_numbers = #tpu.dot_dimension_numbers<[1], [0], [0], [1], [0, 0, 1, 1], [], []>} : vector<16x32xf32>, vector<32x32xf32>, vector<16x32xf32> -> vector<16x32xf32>
    %17 = arith.addf %13, %16 : vector<16x32xf32>
    %c2_19 = arith.constant 2 : index
    %c0_20 = arith.constant 0 : index
    %c0_21 = arith.constant 0 : index
    %18 = vector.load %arg2[%c2_19, %c0_20, %c0_21] : memref<12x32x32xf32, #tpu.memory_space<vmem>>, vector<1x32x32xf32>
    %19 = vector.shape_cast %18 : vector<1x32x32xf32> to vector<32x32xf32>
    %cst_22 = arith.constant dense<0.000000e+00> : vector<16x32xf32>
    %20 = tpu.matmul %8, %19, %cst_22 {dimension_numbers = #tpu.dot_dimension_numbers<[1], [0], [0], [1], [0, 0, 1, 1], [], []>} : vector<16x32xf32>, vector<32x32xf32>, vector<16x32xf32> -> vector<16x32xf32>
    %21 = arith.addf %17, %20 : vector<16x32xf32>
    %c0_23 = arith.constant 0 : index
    %c0_24 = arith.constant 0 : index
    %c0_25 = arith.constant 0 : index
    %22 = vector.load %arg3[%c0_23, %c0_24, %c0_25] : memref<4x1x32xf32, #tpu.memory_space<vmem>>, vector<1x1x32xf32>
    %23 = vector.shape_cast %22 : vector<1x1x32xf32> to vector<1x32xf32>
    %24 = vector.broadcast %23 : vector<1x32xf32> to vector<16x32xf32>
    %25 = arith.addf %21, %24 : vector<16x32xf32>
    %c1_26 = arith.constant 1 : index
    %c0_27 = arith.constant 0 : index
    %26 = vector.load %arg15[%c1_26, %c0_27] : memref<18x32xf32, #tpu.memory_space<vmem>>, vector<16x32xf32>
    tpu.vector_store %arg15[%c1_26, %c0_27], %25 {strides = array<i32>} : memref<18x32xf32, #tpu.memory_space<vmem>>, vector<16x32xf32>,
    %c0_28 = arith.constant 0 : index
    %c0_29 = arith.constant 0 : index
    %27 = vector.load %arg15[%c0_28, %c0_29] : memref<18x32xf32, #tpu.memory_space<vmem>>, vector<16x32xf32>
    %c1_30 = arith.constant 1 : index
    %c0_31 = arith.constant 0 : index
    %28 = vector.load %arg15[%c1_30, %c0_31] : memref<18x32xf32, #tpu.memory_space<vmem>>, vector<16x32xf32>
    %c2_32 = arith.constant 2 : index
    %c0_33 = arith.constant 0 : index
    %29 = vector.load %arg15[%c2_32, %c0_33] : memref<18x32xf32, #tpu.memory_space<vmem>>, vector<16x32xf32>
    %cst_34 = arith.constant 0.000000e+00 : f32
    %30 = vector.broadcast %cst_34 : f32 to vector<16x32xf32>
    %cst_35 = arith.constant 0.000000e+00 : f32
    %31 = vector.broadcast %cst_35 : f32 to vector<16x32xf32>
    %c0_36 = arith.constant 0 : index
    %c0_37 = arith.constant 0 : index
    %c0_38 = arith.constant 0 : index
    %32 = vector.load %arg4[%c0_36, %c0_37, %c0_38] : memref<12x32x32xf32, #tpu.memory_space<vmem>>, vector<1x32x32xf32>
    %33 = vector.shape_cast %32 : vector<1x32x32xf32> to vector<32x32xf32>
    %cst_39 = arith.constant dense<0.000000e+00> : vector<16x32xf32>
    %34 = tpu.matmul %27, %33, %cst_39 {dimension_numbers = #tpu.dot_dimension_numbers<[1], [0], [0], [1], [0, 0, 1, 1], [], []>} : vector<16x32xf32>, vector<32x32xf32>, vector<16x32xf32> -> vector<16x32xf32>
    %35 = arith.addf %30, %34 : vector<16x32xf32>
    %c0_40 = arith.constant 0 : index
    %c0_41 = arith.constant 0 : index
    %c0_42 = arith.constant 0 : index
    %36 = vector.load %arg6[%c0_40, %c0_41, %c0_42] : memref<12x32x32xf32, #tpu.memory_space<vmem>>, vector<1x32x32xf32>
    %37 = vector.shape_cast %36 : vector<1x32x32xf32> to vector<32x32xf32>
    %cst_43 = arith.constant dense<0.000000e+00> : vector<16x32xf32>
    %38 = tpu.matmul %27, %37, %cst_43 {dimension_numbers = #tpu.dot_dimension_numbers<[1], [0], [0], [1], [0, 0, 1, 1], [], []>} : vector<16x32xf32>, vector<32x32xf32>, vector<16x32xf32> -> vector<16x32xf32>
    %39 = arith.addf %31, %38 : vector<16x32xf32>
    %c1_44 = arith.constant 1 : index
    %c0_45 = arith.constant 0 : index
    %c0_46 = arith.constant 0 : index
    %40 = vector.load %arg4[%c1_44, %c0_45, %c0_46] : memref<12x32x32xf32, #tpu.memory_space<vmem>>, vector<1x32x32xf32>
    %41 = vector.shape_cast %40 : vector<1x32x32xf32> to vector<32x32xf32>
    %cst_47 = arith.constant dense<0.000000e+00> : vector<16x32xf32>
    %42 = tpu.matmul %28, %41, %cst_47 {dimension_numbers = #tpu.dot_dimension_numbers<[1], [0], [0], [1], [0, 0, 1, 1], [], []>} : vector<16x32xf32>, vector<32x32xf32>, vector<16x32xf32> -> vector<16x32xf32>
    %43 = arith.addf %35, %42 : vector<16x32xf32>
    %c1_48 = arith.constant 1 : index
    %c0_49 = arith.constant 0 : index
    %c0_50 = arith.constant 0 : index
    %44 = vector.load %arg6[%c1_48, %c0_49, %c0_50] : memref<12x32x32xf32, #tpu.memory_space<vmem>>, vector<1x32x32xf32>
    %45 = vector.shape_cast %44 : vector<1x32x32xf32> to vector<32x32xf32>
    %cst_51 = arith.constant dense<0.000000e+00> : vector<16x32xf32>
    %46 = tpu.matmul %28, %45, %cst_51 {dimension_numbers = #tpu.dot_dimension_numbers<[1], [0], [0], [1], [0, 0, 1, 1], [], []>} : vector<16x32xf32>, vector<32x32xf32>, vector<16x32xf32> -> vector<16x32xf32>
    %47 = arith.addf %39, %46 : vector<16x32xf32>
    %c2_52 = arith.constant 2 : index
    %c0_53 = arith.constant 0 : index
    %c0_54 = arith.constant 0 : index
    %48 = vector.load %arg4[%c2_52, %c0_53, %c0_54] : memref<12x32x32xf32, #tpu.memory_space<vmem>>, vector<1x32x32xf32>
    %49 = vector.shape_cast %48 : vector<1x32x32xf32> to vector<32x32xf32>
    %cst_55 = arith.constant dense<0.000000e+00> : vector<16x32xf32>
    %50 = tpu.matmul %29, %49, %cst_55 {dimension_numbers = #tpu.dot_dimension_numbers<[1], [0], [0], [1], [0, 0, 1, 1], [], []>} : vector<16x32xf32>, vector<32x32xf32>, vector<16x32xf32> -> vector<16x32xf32>
    %51 = arith.addf %43, %50 : vector<16x32xf32>
    %c2_56 = arith.constant 2 : index
    %c0_57 = arith.constant 0 : index
    %c0_58 = arith.constant 0 : index
    %52 = vector.load %arg6[%c2_56, %c0_57, %c0_58] : memref<12x32x32xf32, #tpu.memory_space<vmem>>, vector<1x32x32xf32>
    %53 = vector.shape_cast %52 : vector<1x32x32xf32> to vector<32x32xf32>
    %cst_59 = arith.constant dense<0.000000e+00> : vector<16x32xf32>
    %54 = tpu.matmul %29, %53, %cst_59 {dimension_numbers = #tpu.dot_dimension_numbers<[1], [0], [0], [1], [0, 0, 1, 1], [], []>} : vector<16x32xf32>, vector<32x32xf32>, vector<16x32xf32> -> vector<16x32xf32>
    %55 = arith.addf %47, %54 : vector<16x32xf32>
    %c0_60 = arith.constant 0 : index
    %c0_61 = arith.constant 0 : index
    %c0_62 = arith.constant 0 : index
    %56 = vector.load %arg5[%c0_60, %c0_61, %c0_62] : memref<4x1x32xf32, #tpu.memory_space<vmem>>, vector<1x1x32xf32>
    %57 = vector.shape_cast %56 : vector<1x1x32xf32> to vector<1x32xf32>
    %58 = vector.broadcast %57 : vector<1x32xf32> to vector<16x32xf32>
    %59 = arith.addf %51, %58 : vector<16x32xf32>
    %60 = math.tanh %59 : vector<16x32xf32>
    %c0_63 = arith.constant 0 : index
    %c0_64 = arith.constant 0 : index
    %c0_65 = arith.constant 0 : index
    %61 = vector.load %arg7[%c0_63, %c0_64, %c0_65] : memref<4x1x32xf32, #tpu.memory_space<vmem>>, vector<1x1x32xf32>
    %62 = vector.shape_cast %61 : vector<1x1x32xf32> to vector<1x32xf32>
    %63 = vector.broadcast %62 : vector<1x32xf32> to vector<16x32xf32>
    %64 = arith.addf %55, %63 : vector<16x32xf32>
    %65 = arith.negf %64 : vector<16x32xf32>
    %66 = math.exp %65 : vector<16x32xf32>
    %cst_66 = arith.constant 1.000000e+00 : f32
    %67 = vector.broadcast %cst_66 : f32 to vector<16x32xf32>
    %68 = arith.addf %67, %66 : vector<16x32xf32>
    %69 = arith.divf %67, %68 : vector<16x32xf32>
    %70 = arith.mulf %60, %69 : vector<16x32xf32>
    %c0_67 = arith.constant 0 : index
    %c0_68 = arith.constant 0 : index
    %c0_69 = arith.constant 0 : index
    %71 = vector.load %arg8[%c0_67, %c0_68, %c0_69] : memref<4x32x32xf32, #tpu.memory_space<vmem>>, vector<1x32x32xf32>
    %72 = vector.shape_cast %71 : vector<1x32x32xf32> to vector<32x32xf32>
    %cst_70 = arith.constant dense<0.000000e+00> : vector<16x32xf32>
    %73 = tpu.matmul %70, %72, %cst_70 {dimension_numbers = #tpu.dot_dimension_numbers<[1], [0], [0], [1], [0, 0, 1, 1], [], []>} : vector<16x32xf32>, vector<32x32xf32>, vector<16x32xf32> -> vector<16x32xf32>
    %c0_71 = arith.constant 0 : index
    %c0_72 = arith.constant 0 : index
    %c0_73 = arith.constant 0 : index
    %74 = vector.load %arg9[%c0_71, %c0_72, %c0_73] : memref<4x1x32xf32, #tpu.memory_space<vmem>>, vector<1x1x32xf32>
    %75 = vector.shape_cast %74 : vector<1x1x32xf32> to vector<1x32xf32>
    %76 = vector.broadcast %75 : vector<1x32xf32> to vector<16x32xf32>
    %77 = arith.addf %73, %76 : vector<16x32xf32>
    %78 = arith.addf %77, %4 : vector<16x32xf32>
    %c1_74 = arith.constant 1 : index
    %c0_75 = arith.constant 0 : index
    %79 = vector.load %arg15[%c1_74, %c0_75] : memref<18x32xf32, #tpu.memory_space<vmem>>, vector<16x32xf32>
    tpu.vector_store %arg15[%c1_74, %c0_75], %78 {strides = array<i32>} : memref<18x32xf32, #tpu.memory_space<vmem>>, vector<16x32xf32>,
    %c0_76 = arith.constant 0 : index
    %c0_77 = arith.constant 0 : index
    %80 = vector.load %arg15[%c0_76, %c0_77] : memref<18x32xf32, #tpu.memory_space<vmem>>, vector<16x32xf32>
    %c1_78 = arith.constant 1 : index
    %c0_79 = arith.constant 0 : index
    %81 = vector.load %arg15[%c1_78, %c0_79] : memref<18x32xf32, #tpu.memory_space<vmem>>, vector<16x32xf32>
    %c2_80 = arith.constant 2 : index
    %c0_81 = arith.constant 0 : index
    %82 = vector.load %arg15[%c2_80, %c0_81] : memref<18x32xf32, #tpu.memory_space<vmem>>, vector<16x32xf32>
    %cst_82 = arith.constant 0.000000e+00 : f32
    %83 = vector.broadcast %cst_82 : f32 to vector<16x32xf32>
    %c3 = arith.constant 3 : index
    %c0_83 = arith.constant 0 : index
    %c0_84 = arith.constant 0 : index
    %84 = vector.load %arg2[%c3, %c0_83, %c0_84] : memref<12x32x32xf32, #tpu.memory_space<vmem>>, vector<1x32x32xf32>
    %85 = vector.shape_cast %84 : vector<1x32x32xf32> to vector<32x32xf32>
    %cst_85 = arith.constant dense<0.000000e+00> : vector<16x32xf32>
    %86 = tpu.matmul %80, %85, %cst_85 {dimension_numbers = #tpu.dot_dimension_numbers<[1], [0], [0], [1], [0, 0, 1, 1], [], []>} : vector<16x32xf32>, vector<32x32xf32>, vector<16x32xf32> -> vector<16x32xf32>
    %87 = arith.addf %83, %86 : vector<16x32xf32>
    %c4 = arith.constant 4 : index
    %c0_86 = arith.constant 0 : index
    %c0_87 = arith.constant 0 : index
    %88 = vector.load %arg2[%c4, %c0_86, %c0_87] : memref<12x32x32xf32, #tpu.memory_space<vmem>>, vector<1x32x32xf32>
    %89 = vector.shape_cast %88 : vector<1x32x32xf32> to vector<32x32xf32>
    %cst_88 = arith.constant dense<0.000000e+00> : vector<16x32xf32>
    %90 = tpu.matmul %81, %89, %cst_88 {dimension_numbers = #tpu.dot_dimension_numbers<[1], [0], [0], [1], [0, 0, 1, 1], [], []>} : vector<16x32xf32>, vector<32x32xf32>, vector<16x32xf32> -> vector<16x32xf32>
    %91 = arith.addf %87, %90 : vector<16x32xf32>
    %c5 = arith.constant 5 : index
    %c0_89 = arith.constant 0 : index
    %c0_90 = arith.constant 0 : index
    %92 = vector.load %arg2[%c5, %c0_89, %c0_90] : memref<12x32x32xf32, #tpu.memory_space<vmem>>, vector<1x32x32xf32>
    %93 = vector.shape_cast %92 : vector<1x32x32xf32> to vector<32x32xf32>
    %cst_91 = arith.constant dense<0.000000e+00> : vector<16x32xf32>
    %94 = tpu.matmul %82, %93, %cst_91 {dimension_numbers = #tpu.dot_dimension_numbers<[1], [0], [0], [1], [0, 0, 1, 1], [], []>} : vector<16x32xf32>, vector<32x32xf32>, vector<16x32xf32> -> vector<16x32xf32>
    %95 = arith.addf %91, %94 : vector<16x32xf32>
    %c1_92 = arith.constant 1 : index
    %c0_93 = arith.constant 0 : index
    %c0_94 = arith.constant 0 : index
    %96 = vector.load %arg3[%c1_92, %c0_93, %c0_94] : memref<4x1x32xf32, #tpu.memory_space<vmem>>, vector<1x1x32xf32>
    %97 = vector.shape_cast %96 : vector<1x1x32xf32> to vector<1x32xf32>
    %98 = vector.broadcast %97 : vector<1x32xf32> to vector<16x32xf32>
    %99 = arith.addf %95, %98 : vector<16x32xf32>
    %c1_95 = arith.constant 1 : index
    %c0_96 = arith.constant 0 : index
    %100 = vector.load %arg15[%c1_95, %c0_96] : memref<18x32xf32, #tpu.memory_space<vmem>>, vector<16x32xf32>
    tpu.vector_store %arg15[%c1_95, %c0_96], %99 {strides = array<i32>} : memref<18x32xf32, #tpu.memory_space<vmem>>, vector<16x32xf32>,
    %c0_97 = arith.constant 0 : index
    %c0_98 = arith.constant 0 : index
    %101 = vector.load %arg15[%c0_97, %c0_98] : memref<18x32xf32, #tpu.memory_space<vmem>>, vector<16x32xf32>
    %c1_99 = arith.constant 1 : index
    %c0_100 = arith.constant 0 : index
    %102 = vector.load %arg15[%c1_99, %c0_100] : memref<18x32xf32, #tpu.memory_space<vmem>>, vector<16x32xf32>
    %c2_101 = arith.constant 2 : index
    %c0_102 = arith.constant 0 : index
    %103 = vector.load %arg15[%c2_101, %c0_102] : memref<18x32xf32, #tpu.memory_space<vmem>>, vector<16x32xf32>
    %cst_103 = arith.constant 0.000000e+00 : f32
    %104 = vector.broadcast %cst_103 : f32 to vector<16x32xf32>
    %cst_104 = arith.constant 0.000000e+00 : f32
    %105 = vector.broadcast %cst_104 : f32 to vector<16x32xf32>
    %c3_105 = arith.constant 3 : index
    %c0_106 = arith.constant 0 : index
    %c0_107 = arith.constant 0 : index
    %106 = vector.load %arg4[%c3_105, %c0_106, %c0_107] : memref<12x32x32xf32, #tpu.memory_space<vmem>>, vector<1x32x32xf32>
    %107 = vector.shape_cast %106 : vector<1x32x32xf32> to vector<32x32xf32>
    %cst_108 = arith.constant dense<0.000000e+00> : vector<16x32xf32>
    %108 = tpu.matmul %101, %107, %cst_108 {dimension_numbers = #tpu.dot_dimension_numbers<[1], [0], [0], [1], [0, 0, 1, 1], [], []>} : vector<16x32xf32>, vector<32x32xf32>, vector<16x32xf32> -> vector<16x32xf32>
    %109 = arith.addf %104, %108 : vector<16x32xf32>
    %c3_109 = arith.constant 3 : index
    %c0_110 = arith.constant 0 : index
    %c0_111 = arith.constant 0 : index
    %110 = vector.load %arg6[%c3_109, %c0_110, %c0_111] : memref<12x32x32xf32, #tpu.memory_space<vmem>>, vector<1x32x32xf32>
    %111 = vector.shape_cast %110 : vector<1x32x32xf32> to vector<32x32xf32>
    %cst_112 = arith.constant dense<0.000000e+00> : vector<16x32xf32>
    %112 = tpu.matmul %101, %111, %cst_112 {dimension_numbers = #tpu.dot_dimension_numbers<[1], [0], [0], [1], [0, 0, 1, 1], [], []>} : vector<16x32xf32>, vector<32x32xf32>, vector<16x32xf32> -> vector<16x32xf32>
    %113 = arith.addf %105, %112 : vector<16x32xf32>
    %c4_113 = arith.constant 4 : index
    %c0_114 = arith.constant 0 : index
    %c0_115 = arith.constant 0 : index
    %114 = vector.load %arg4[%c4_113, %c0_114, %c0_115] : memref<12x32x32xf32, #tpu.memory_space<vmem>>, vector<1x32x32xf32>
    %115 = vector.shape_cast %114 : vector<1x32x32xf32> to vector<32x32xf32>
    %cst_116 = arith.constant dense<0.000000e+00> : vector<16x32xf32>
    %116 = tpu.matmul %102, %115, %cst_116 {dimension_numbers = #tpu.dot_dimension_numbers<[1], [0], [0], [1], [0, 0, 1, 1], [], []>} : vector<16x32xf32>, vector<32x32xf32>, vector<16x32xf32> -> vector<16x32xf32>
    %117 = arith.addf %109, %116 : vector<16x32xf32>
    %c4_117 = arith.constant 4 : index
    %c0_118 = arith.constant 0 : index
    %c0_119 = arith.constant 0 : index
    %118 = vector.load %arg6[%c4_117, %c0_118, %c0_119] : memref<12x32x32xf32, #tpu.memory_space<vmem>>, vector<1x32x32xf32>
    %119 = vector.shape_cast %118 : vector<1x32x32xf32> to vector<32x32xf32>
    %cst_120 = arith.constant dense<0.000000e+00> : vector<16x32xf32>
    %120 = tpu.matmul %102, %119, %cst_120 {dimension_numbers = #tpu.dot_dimension_numbers<[1], [0], [0], [1], [0, 0, 1, 1], [], []>} : vector<16x32xf32>, vector<32x32xf32>, vector<16x32xf32> -> vector<16x32xf32>
    %121 = arith.addf %113, %120 : vector<16x32xf32>
    %c5_121 = arith.constant 5 : index
    %c0_122 = arith.constant 0 : index
    %c0_123 = arith.constant 0 : index
    %122 = vector.load %arg4[%c5_121, %c0_122, %c0_123] : memref<12x32x32xf32, #tpu.memory_space<vmem>>, vector<1x32x32xf32>
    %123 = vector.shape_cast %122 : vector<1x32x32xf32> to vector<32x32xf32>
    %cst_124 = arith.constant dense<0.000000e+00> : vector<16x32xf32>
    %124 = tpu.matmul %103, %123, %cst_124 {dimension_numbers = #tpu.dot_dimension_numbers<[1], [0], [0], [1], [0, 0, 1, 1], [], []>} : vector<16x32xf32>, vector<32x32xf32>, vector<16x32xf32> -> vector<16x32xf32>
    %125 = arith.addf %117, %124 : vector<16x32xf32>
    %c5_125 = arith.constant 5 : index
    %c0_126 = arith.constant 0 : index
    %c0_127 = arith.constant 0 : index
    %126 = vector.load %arg6[%c5_125, %c0_126, %c0_127] : memref<12x32x32xf32, #tpu.memory_space<vmem>>, vector<1x32x32xf32>
    %127 = vector.shape_cast %126 : vector<1x32x32xf32> to vector<32x32xf32>
    %cst_128 = arith.constant dense<0.000000e+00> : vector<16x32xf32>
    %128 = tpu.matmul %103, %127, %cst_128 {dimension_numbers = #tpu.dot_dimension_numbers<[1], [0], [0], [1], [0, 0, 1, 1], [], []>} : vector<16x32xf32>, vector<32x32xf32>, vector<16x32xf32> -> vector<16x32xf32>
    %129 = arith.addf %121, %128 : vector<16x32xf32>
    %c1_129 = arith.constant 1 : index
    %c0_130 = arith.constant 0 : index
    %c0_131 = arith.constant 0 : index
    %130 = vector.load %arg5[%c1_129, %c0_130, %c0_131] : memref<4x1x32xf32, #tpu.memory_space<vmem>>, vector<1x1x32xf32>
    %131 = vector.shape_cast %130 : vector<1x1x32xf32> to vector<1x32xf32>
    %132 = vector.broadcast %131 : vector<1x32xf32> to vector<16x32xf32>
    %133 = arith.addf %125, %132 : vector<16x32xf32>
    %134 = math.tanh %133 : vector<16x32xf32>
    %c1_132 = arith.constant 1 : index
    %c0_133 = arith.constant 0 : index
    %c0_134 = arith.constant 0 : index
    %135 = vector.load %arg7[%c1_132, %c0_133, %c0_134] : memref<4x1x32xf32, #tpu.memory_space<vmem>>, vector<1x1x32xf32>
    %136 = vector.shape_cast %135 : vector<1x1x32xf32> to vector<1x32xf32>
    %137 = vector.broadcast %136 : vector<1x32xf32> to vector<16x32xf32>
    %138 = arith.addf %129, %137 : vector<16x32xf32>
    %139 = arith.negf %138 : vector<16x32xf32>
    %140 = math.exp %139 : vector<16x32xf32>
    %cst_135 = arith.constant 1.000000e+00 : f32
    %141 = vector.broadcast %cst_135 : f32 to vector<16x32xf32>
    %142 = arith.addf %141, %140 : vector<16x32xf32>
    %143 = arith.divf %141, %142 : vector<16x32xf32>
    %144 = arith.mulf %134, %143 : vector<16x32xf32>
    %c1_136 = arith.constant 1 : index
    %c0_137 = arith.constant 0 : index
    %c0_138 = arith.constant 0 : index
    %145 = vector.load %arg8[%c1_136, %c0_137, %c0_138] : memref<4x32x32xf32, #tpu.memory_space<vmem>>, vector<1x32x32xf32>
    %146 = vector.shape_cast %145 : vector<1x32x32xf32> to vector<32x32xf32>
    %cst_139 = arith.constant dense<0.000000e+00> : vector<16x32xf32>
    %147 = tpu.matmul %144, %146, %cst_139 {dimension_numbers = #tpu.dot_dimension_numbers<[1], [0], [0], [1], [0, 0, 1, 1], [], []>} : vector<16x32xf32>, vector<32x32xf32>, vector<16x32xf32> -> vector<16x32xf32>
    %c1_140 = arith.constant 1 : index
    %c0_141 = arith.constant 0 : index
    %c0_142 = arith.constant 0 : index
    %148 = vector.load %arg9[%c1_140, %c0_141, %c0_142] : memref<4x1x32xf32, #tpu.memory_space<vmem>>, vector<1x1x32xf32>
    %149 = vector.shape_cast %148 : vector<1x1x32xf32> to vector<1x32xf32>
    %150 = vector.broadcast %149 : vector<1x32xf32> to vector<16x32xf32>
    %151 = arith.addf %147, %150 : vector<16x32xf32>
    %152 = arith.addf %151, %78 : vector<16x32xf32>
    %153 = tpu.transpose %152, [1, 0] : vector<16x32xf32> -> vector<32x16xf32>
    %c0_143 = arith.constant 0 : index
    %c0_144 = arith.constant 0 : index
    %c0_145 = arith.constant 0 : index
    %154 = vector.load %arg12[%c0_143, %c0_144, %c0_145] : memref<1x32x16xf32, #tpu.memory_space<vmem>>, vector<1x32x16xf32>
    %155 = vector.shape_cast %154 : vector<1x32x16xf32> to vector<32x16xf32>
    %156 = vector.shape_cast %153 : vector<32x16xf32> to vector<1x32x16xf32>
    tpu.vector_store %arg12[%c0_143, %c0_144, %c0_145], %156 {strides = array<i32>} : memref<1x32x16xf32, #tpu.memory_space<vmem>>, vector<1x32x16xf32>,
    %c1_146 = arith.constant 1 : index
    %c0_147 = arith.constant 0 : index
    %157 = vector.load %arg15[%c1_146, %c0_147] : memref<18x32xf32, #tpu.memory_space<vmem>>, vector<16x32xf32>
    tpu.vector_store %arg15[%c1_146, %c0_147], %152 {strides = array<i32>} : memref<18x32xf32, #tpu.memory_space<vmem>>, vector<16x32xf32>,
    %c1_148 = arith.constant 1 : index
    %c0_149 = arith.constant 0 : index
    %158 = tpu.strided_load %arg15[%c1_148, %c0_149] {strides = array<i32: 2, 1>} : memref<18x32xf32, #tpu.memory_space<vmem>>, vector<8x32xf32>
    %c0_150 = arith.constant 0 : index
    %c0_151 = arith.constant 0 : index
    %c0_152 = arith.constant 0 : index
    %159 = vector.load %arg10[%c0_150, %c0_151, %c0_152] : memref<2x32x32xf32, #tpu.memory_space<vmem>>, vector<1x32x32xf32>
    %160 = vector.shape_cast %159 : vector<1x32x32xf32> to vector<32x32xf32>
    %cst_153 = arith.constant dense<0.000000e+00> : vector<8x32xf32>
    %161 = tpu.matmul %158, %160, %cst_153 {dimension_numbers = #tpu.dot_dimension_numbers<[1], [0], [0], [1], [0, 0, 1, 1], [], []>} : vector<8x32xf32>, vector<32x32xf32>, vector<8x32xf32> -> vector<8x32xf32>
    %c0_154 = arith.constant 0 : index
    %c0_155 = arith.constant 0 : index
    %c0_156 = arith.constant 0 : index
    %162 = vector.load %arg11[%c0_154, %c0_155, %c0_156] : memref<2x1x32xf32, #tpu.memory_space<vmem>>, vector<1x1x32xf32>
    %163 = vector.shape_cast %162 : vector<1x1x32xf32> to vector<1x32xf32>
    %164 = vector.broadcast %163 : vector<1x32xf32> to vector<8x32xf32>
    %165 = arith.addf %161, %164 : vector<8x32xf32>
    %cst_157 = arith.constant 0.000000e+00 : f32
    %166 = vector.broadcast %cst_157 : f32 to vector<1x32xf32>
    %c9 = arith.constant 9 : index
    %c0_158 = arith.constant 0 : index
    %167 = vector.load %arg15[%c9, %c0_158] : memref<18x32xf32, #tpu.memory_space<vmem>>, vector<1x32xf32>
    tpu.vector_store %arg15[%c9, %c0_158], %166 {strides = array<i32>} : memref<18x32xf32, #tpu.memory_space<vmem>>, vector<1x32xf32>,
    %c1_159 = arith.constant 1 : index
    %c0_160 = arith.constant 0 : index
    %168 = vector.load %arg15[%c1_159, %c0_160] : memref<18x32xf32, #tpu.memory_space<vmem>>, vector<8x32xf32>
    tpu.vector_store %arg15[%c1_159, %c0_160], %165 {strides = array<i32>} : memref<18x32xf32, #tpu.memory_space<vmem>>, vector<8x32xf32>,
    %c0_161 = arith.constant 0 : index
    %c0_162 = arith.constant 0 : index
    %169 = vector.load %arg15[%c0_161, %c0_162] : memref<18x32xf32, #tpu.memory_space<vmem>>, vector<8x32xf32>
    %c1_163 = arith.constant 1 : index
    %c0_164 = arith.constant 0 : index
    %170 = vector.load %arg15[%c1_163, %c0_164] : memref<18x32xf32, #tpu.memory_space<vmem>>, vector<8x32xf32>
    %c2_165 = arith.constant 2 : index
    %c0_166 = arith.constant 0 : index
    %171 = vector.load %arg15[%c2_165, %c0_166] : memref<18x32xf32, #tpu.memory_space<vmem>>, vector<8x32xf32>
    %cst_167 = arith.constant 0.000000e+00 : f32
    %172 = vector.broadcast %cst_167 : f32 to vector<8x32xf32>
    %c6 = arith.constant 6 : index
    %c0_168 = arith.constant 0 : index
    %c0_169 = arith.constant 0 : index
    %173 = vector.load %arg2[%c6, %c0_168, %c0_169] : memref<12x32x32xf32, #tpu.memory_space<vmem>>, vector<1x32x32xf32>
    %174 = vector.shape_cast %173 : vector<1x32x32xf32> to vector<32x32xf32>
    %cst_170 = arith.constant dense<0.000000e+00> : vector<8x32xf32>
    %175 = tpu.matmul %169, %174, %cst_170 {dimension_numbers = #tpu.dot_dimension_numbers<[1], [0], [0], [1], [0, 0, 1, 1], [], []>} : vector<8x32xf32>, vector<32x32xf32>, vector<8x32xf32> -> vector<8x32xf32>
    %176 = arith.addf %172, %175 : vector<8x32xf32>
    %c7 = arith.constant 7 : index
    %c0_171 = arith.constant 0 : index
    %c0_172 = arith.constant 0 : index
    %177 = vector.load %arg2[%c7, %c0_171, %c0_172] : memref<12x32x32xf32, #tpu.memory_space<vmem>>, vector<1x32x32xf32>
    %178 = vector.shape_cast %177 : vector<1x32x32xf32> to vector<32x32xf32>
    %cst_173 = arith.constant dense<0.000000e+00> : vector<8x32xf32>
    %179 = tpu.matmul %170, %178, %cst_173 {dimension_numbers = #tpu.dot_dimension_numbers<[1], [0], [0], [1], [0, 0, 1, 1], [], []>} : vector<8x32xf32>, vector<32x32xf32>, vector<8x32xf32> -> vector<8x32xf32>
    %180 = arith.addf %176, %179 : vector<8x32xf32>
    %c8 = arith.constant 8 : index
    %c0_174 = arith.constant 0 : index
    %c0_175 = arith.constant 0 : index
    %181 = vector.load %arg2[%c8, %c0_174, %c0_175] : memref<12x32x32xf32, #tpu.memory_space<vmem>>, vector<1x32x32xf32>
    %182 = vector.shape_cast %181 : vector<1x32x32xf32> to vector<32x32xf32>
    %cst_176 = arith.constant dense<0.000000e+00> : vector<8x32xf32>
    %183 = tpu.matmul %171, %182, %cst_176 {dimension_numbers = #tpu.dot_dimension_numbers<[1], [0], [0], [1], [0, 0, 1, 1], [], []>} : vector<8x32xf32>, vector<32x32xf32>, vector<8x32xf32> -> vector<8x32xf32>
    %184 = arith.addf %180, %183 : vector<8x32xf32>
    %c2_177 = arith.constant 2 : index
    %c0_178 = arith.constant 0 : index
    %c0_179 = arith.constant 0 : index
    %185 = vector.load %arg3[%c2_177, %c0_178, %c0_179] : memref<4x1x32xf32, #tpu.memory_space<vmem>>, vector<1x1x32xf32>
    %186 = vector.shape_cast %185 : vector<1x1x32xf32> to vector<1x32xf32>
    %187 = vector.broadcast %186 : vector<1x32xf32> to vector<8x32xf32>
    %188 = arith.addf %184, %187 : vector<8x32xf32>
    %c1_180 = arith.constant 1 : index
    %c0_181 = arith.constant 0 : index
    %189 = vector.load %arg15[%c1_180, %c0_181] : memref<18x32xf32, #tpu.memory_space<vmem>>, vector<8x32xf32>
    tpu.vector_store %arg15[%c1_180, %c0_181], %188 {strides = array<i32>} : memref<18x32xf32, #tpu.memory_space<vmem>>, vector<8x32xf32>,
    %c0_182 = arith.constant 0 : index
    %c0_183 = arith.constant 0 : index
    %190 = vector.load %arg15[%c0_182, %c0_183] : memref<18x32xf32, #tpu.memory_space<vmem>>, vector<8x32xf32>
    %c1_184 = arith.constant 1 : index
    %c0_185 = arith.constant 0 : index
    %191 = vector.load %arg15[%c1_184, %c0_185] : memref<18x32xf32, #tpu.memory_space<vmem>>, vector<8x32xf32>
    %c2_186 = arith.constant 2 : index
    %c0_187 = arith.constant 0 : index
    %192 = vector.load %arg15[%c2_186, %c0_187] : memref<18x32xf32, #tpu.memory_space<vmem>>, vector<8x32xf32>
    %cst_188 = arith.constant 0.000000e+00 : f32
    %193 = vector.broadcast %cst_188 : f32 to vector<8x32xf32>
    %cst_189 = arith.constant 0.000000e+00 : f32
    %194 = vector.broadcast %cst_189 : f32 to vector<8x32xf32>
    %c6_190 = arith.constant 6 : index
    %c0_191 = arith.constant 0 : index
    %c0_192 = arith.constant 0 : index
    %195 = vector.load %arg4[%c6_190, %c0_191, %c0_192] : memref<12x32x32xf32, #tpu.memory_space<vmem>>, vector<1x32x32xf32>
    %196 = vector.shape_cast %195 : vector<1x32x32xf32> to vector<32x32xf32>
    %cst_193 = arith.constant dense<0.000000e+00> : vector<8x32xf32>
    %197 = tpu.matmul %190, %196, %cst_193 {dimension_numbers = #tpu.dot_dimension_numbers<[1], [0], [0], [1], [0, 0, 1, 1], [], []>} : vector<8x32xf32>, vector<32x32xf32>, vector<8x32xf32> -> vector<8x32xf32>
    %198 = arith.addf %193, %197 : vector<8x32xf32>
    %c6_194 = arith.constant 6 : index
    %c0_195 = arith.constant 0 : index
    %c0_196 = arith.constant 0 : index
    %199 = vector.load %arg6[%c6_194, %c0_195, %c0_196] : memref<12x32x32xf32, #tpu.memory_space<vmem>>, vector<1x32x32xf32>
    %200 = vector.shape_cast %199 : vector<1x32x32xf32> to vector<32x32xf32>
    %cst_197 = arith.constant dense<0.000000e+00> : vector<8x32xf32>
    %201 = tpu.matmul %190, %200, %cst_197 {dimension_numbers = #tpu.dot_dimension_numbers<[1], [0], [0], [1], [0, 0, 1, 1], [], []>} : vector<8x32xf32>, vector<32x32xf32>, vector<8x32xf32> -> vector<8x32xf32>
    %202 = arith.addf %194, %201 : vector<8x32xf32>
    %c7_198 = arith.constant 7 : index
    %c0_199 = arith.constant 0 : index
    %c0_200 = arith.constant 0 : index
    %203 = vector.load %arg4[%c7_198, %c0_199, %c0_200] : memref<12x32x32xf32, #tpu.memory_space<vmem>>, vector<1x32x32xf32>
    %204 = vector.shape_cast %203 : vector<1x32x32xf32> to vector<32x32xf32>
    %cst_201 = arith.constant dense<0.000000e+00> : vector<8x32xf32>
    %205 = tpu.matmul %191, %204, %cst_201 {dimension_numbers = #tpu.dot_dimension_numbers<[1], [0], [0], [1], [0, 0, 1, 1], [], []>} : vector<8x32xf32>, vector<32x32xf32>, vector<8x32xf32> -> vector<8x32xf32>
    %206 = arith.addf %198, %205 : vector<8x32xf32>
    %c7_202 = arith.constant 7 : index
    %c0_203 = arith.constant 0 : index
    %c0_204 = arith.constant 0 : index
    %207 = vector.load %arg6[%c7_202, %c0_203, %c0_204] : memref<12x32x32xf32, #tpu.memory_space<vmem>>, vector<1x32x32xf32>
    %208 = vector.shape_cast %207 : vector<1x32x32xf32> to vector<32x32xf32>
    %cst_205 = arith.constant dense<0.000000e+00> : vector<8x32xf32>
    %209 = tpu.matmul %191, %208, %cst_205 {dimension_numbers = #tpu.dot_dimension_numbers<[1], [0], [0], [1], [0, 0, 1, 1], [], []>} : vector<8x32xf32>, vector<32x32xf32>, vector<8x32xf32> -> vector<8x32xf32>
    %210 = arith.addf %202, %209 : vector<8x32xf32>
    %c8_206 = arith.constant 8 : index
    %c0_207 = arith.constant 0 : index
    %c0_208 = arith.constant 0 : index
    %211 = vector.load %arg4[%c8_206, %c0_207, %c0_208] : memref<12x32x32xf32, #tpu.memory_space<vmem>>, vector<1x32x32xf32>
    %212 = vector.shape_cast %211 : vector<1x32x32xf32> to vector<32x32xf32>
    %cst_209 = arith.constant dense<0.000000e+00> : vector<8x32xf32>
    %213 = tpu.matmul %192, %212, %cst_209 {dimension_numbers = #tpu.dot_dimension_numbers<[1], [0], [0], [1], [0, 0, 1, 1], [], []>} : vector<8x32xf32>, vector<32x32xf32>, vector<8x32xf32> -> vector<8x32xf32>
    %214 = arith.addf %206, %213 : vector<8x32xf32>
    %c8_210 = arith.constant 8 : index
    %c0_211 = arith.constant 0 : index
    %c0_212 = arith.constant 0 : index
    %215 = vector.load %arg6[%c8_210, %c0_211, %c0_212] : memref<12x32x32xf32, #tpu.memory_space<vmem>>, vector<1x32x32xf32>
    %216 = vector.shape_cast %215 : vector<1x32x32xf32> to vector<32x32xf32>
    %cst_213 = arith.constant dense<0.000000e+00> : vector<8x32xf32>
    %217 = tpu.matmul %192, %216, %cst_213 {dimension_numbers = #tpu.dot_dimension_numbers<[1], [0], [0], [1], [0, 0, 1, 1], [], []>} : vector<8x32xf32>, vector<32x32xf32>, vector<8x32xf32> -> vector<8x32xf32>
    %218 = arith.addf %210, %217 : vector<8x32xf32>
    %c2_214 = arith.constant 2 : index
    %c0_215 = arith.constant 0 : index
    %c0_216 = arith.constant 0 : index
    %219 = vector.load %arg5[%c2_214, %c0_215, %c0_216] : memref<4x1x32xf32, #tpu.memory_space<vmem>>, vector<1x1x32xf32>
    %220 = vector.shape_cast %219 : vector<1x1x32xf32> to vector<1x32xf32>
    %221 = vector.broadcast %220 : vector<1x32xf32> to vector<8x32xf32>
    %222 = arith.addf %214, %221 : vector<8x32xf32>
    %223 = math.tanh %222 : vector<8x32xf32>
    %c2_217 = arith.constant 2 : index
    %c0_218 = arith.constant 0 : index
    %c0_219 = arith.constant 0 : index
    %224 = vector.load %arg7[%c2_217, %c0_218, %c0_219] : memref<4x1x32xf32, #tpu.memory_space<vmem>>, vector<1x1x32xf32>
    %225 = vector.shape_cast %224 : vector<1x1x32xf32> to vector<1x32xf32>
    %226 = vector.broadcast %225 : vector<1x32xf32> to vector<8x32xf32>
    %227 = arith.addf %218, %226 : vector<8x32xf32>
    %228 = arith.negf %227 : vector<8x32xf32>
    %229 = math.exp %228 : vector<8x32xf32>
    %cst_220 = arith.constant 1.000000e+00 : f32
    %230 = vector.broadcast %cst_220 : f32 to vector<8x32xf32>
    %231 = arith.addf %230, %229 : vector<8x32xf32>
    %232 = arith.divf %230, %231 : vector<8x32xf32>
    %233 = arith.mulf %223, %232 : vector<8x32xf32>
    %c2_221 = arith.constant 2 : index
    %c0_222 = arith.constant 0 : index
    %c0_223 = arith.constant 0 : index
    %234 = vector.load %arg8[%c2_221, %c0_222, %c0_223] : memref<4x32x32xf32, #tpu.memory_space<vmem>>, vector<1x32x32xf32>
    %235 = vector.shape_cast %234 : vector<1x32x32xf32> to vector<32x32xf32>
    %cst_224 = arith.constant dense<0.000000e+00> : vector<8x32xf32>
    %236 = tpu.matmul %233, %235, %cst_224 {dimension_numbers = #tpu.dot_dimension_numbers<[1], [0], [0], [1], [0, 0, 1, 1], [], []>} : vector<8x32xf32>, vector<32x32xf32>, vector<8x32xf32> -> vector<8x32xf32>
    %c2_225 = arith.constant 2 : index
    %c0_226 = arith.constant 0 : index
    %c0_227 = arith.constant 0 : index
    %237 = vector.load %arg9[%c2_225, %c0_226, %c0_227] : memref<4x1x32xf32, #tpu.memory_space<vmem>>, vector<1x1x32xf32>
    %238 = vector.shape_cast %237 : vector<1x1x32xf32> to vector<1x32xf32>
    %239 = vector.broadcast %238 : vector<1x32xf32> to vector<8x32xf32>
    %240 = arith.addf %236, %239 : vector<8x32xf32>
    %241 = arith.addf %240, %165 : vector<8x32xf32>
    %c1_228 = arith.constant 1 : index
    %c0_229 = arith.constant 0 : index
    %242 = vector.load %arg15[%c1_228, %c0_229] : memref<18x32xf32, #tpu.memory_space<vmem>>, vector<8x32xf32>
    tpu.vector_store %arg15[%c1_228, %c0_229], %241 {strides = array<i32>} : memref<18x32xf32, #tpu.memory_space<vmem>>, vector<8x32xf32>,
    %c0_230 = arith.constant 0 : index
    %c0_231 = arith.constant 0 : index
    %243 = vector.load %arg15[%c0_230, %c0_231] : memref<18x32xf32, #tpu.memory_space<vmem>>, vector<8x32xf32>
    %c1_232 = arith.constant 1 : index
    %c0_233 = arith.constant 0 : index
    %244 = vector.load %arg15[%c1_232, %c0_233] : memref<18x32xf32, #tpu.memory_space<vmem>>, vector<8x32xf32>
    %c2_234 = arith.constant 2 : index
    %c0_235 = arith.constant 0 : index
    %245 = vector.load %arg15[%c2_234, %c0_235] : memref<18x32xf32, #tpu.memory_space<vmem>>, vector<8x32xf32>
    %cst_236 = arith.constant 0.000000e+00 : f32
    %246 = vector.broadcast %cst_236 : f32 to vector<8x32xf32>
    %c9_237 = arith.constant 9 : index
    %c0_238 = arith.constant 0 : index
    %c0_239 = arith.constant 0 : index
    %247 = vector.load %arg2[%c9_237, %c0_238, %c0_239] : memref<12x32x32xf32, #tpu.memory_space<vmem>>, vector<1x32x32xf32>
    %248 = vector.shape_cast %247 : vector<1x32x32xf32> to vector<32x32xf32>
    %cst_240 = arith.constant dense<0.000000e+00> : vector<8x32xf32>
    %249 = tpu.matmul %243, %248, %cst_240 {dimension_numbers = #tpu.dot_dimension_numbers<[1], [0], [0], [1], [0, 0, 1, 1], [], []>} : vector<8x32xf32>, vector<32x32xf32>, vector<8x32xf32> -> vector<8x32xf32>
    %250 = arith.addf %246, %249 : vector<8x32xf32>
    %c10 = arith.constant 10 : index
    %c0_241 = arith.constant 0 : index
    %c0_242 = arith.constant 0 : index
    %251 = vector.load %arg2[%c10, %c0_241, %c0_242] : memref<12x32x32xf32, #tpu.memory_space<vmem>>, vector<1x32x32xf32>
    %252 = vector.shape_cast %251 : vector<1x32x32xf32> to vector<32x32xf32>
    %cst_243 = arith.constant dense<0.000000e+00> : vector<8x32xf32>
    %253 = tpu.matmul %244, %252, %cst_243 {dimension_numbers = #tpu.dot_dimension_numbers<[1], [0], [0], [1], [0, 0, 1, 1], [], []>} : vector<8x32xf32>, vector<32x32xf32>, vector<8x32xf32> -> vector<8x32xf32>
    %254 = arith.addf %250, %253 : vector<8x32xf32>
    %c11 = arith.constant 11 : index
    %c0_244 = arith.constant 0 : index
    %c0_245 = arith.constant 0 : index
    %255 = vector.load %arg2[%c11, %c0_244, %c0_245] : memref<12x32x32xf32, #tpu.memory_space<vmem>>, vector<1x32x32xf32>
    %256 = vector.shape_cast %255 : vector<1x32x32xf32> to vector<32x32xf32>
    %cst_246 = arith.constant dense<0.000000e+00> : vector<8x32xf32>
    %257 = tpu.matmul %245, %256, %cst_246 {dimension_numbers = #tpu.dot_dimension_numbers<[1], [0], [0], [1], [0, 0, 1, 1], [], []>} : vector<8x32xf32>, vector<32x32xf32>, vector<8x32xf32> -> vector<8x32xf32>
    %258 = arith.addf %254, %257 : vector<8x32xf32>
    %c3_247 = arith.constant 3 : index
    %c0_248 = arith.constant 0 : index
    %c0_249 = arith.constant 0 : index
    %259 = vector.load %arg3[%c3_247, %c0_248, %c0_249] : memref<4x1x32xf32, #tpu.memory_space<vmem>>, vector<1x1x32xf32>
    %260 = vector.shape_cast %259 : vector<1x1x32xf32> to vector<1x32xf32>
    %261 = vector.broadcast %260 : vector<1x32xf32> to vector<8x32xf32>
    %262 = arith.addf %258, %261 : vector<8x32xf32>
    %c1_250 = arith.constant 1 : index
    %c0_251 = arith.constant 0 : index
    %263 = vector.load %arg15[%c1_250, %c0_251] : memref<18x32xf32, #tpu.memory_space<vmem>>, vector<8x32xf32>
    tpu.vector_store %arg15[%c1_250, %c0_251], %262 {strides = array<i32>} : memref<18x32xf32, #tpu.memory_space<vmem>>, vector<8x32xf32>,
    %c0_252 = arith.constant 0 : index
    %c0_253 = arith.constant 0 : index
    %264 = vector.load %arg15[%c0_252, %c0_253] : memref<18x32xf32, #tpu.memory_space<vmem>>, vector<8x32xf32>
    %c1_254 = arith.constant 1 : index
    %c0_255 = arith.constant 0 : index
    %265 = vector.load %arg15[%c1_254, %c0_255] : memref<18x32xf32, #tpu.memory_space<vmem>>, vector<8x32xf32>
    %c2_256 = arith.constant 2 : index
    %c0_257 = arith.constant 0 : index
    %266 = vector.load %arg15[%c2_256, %c0_257] : memref<18x32xf32, #tpu.memory_space<vmem>>, vector<8x32xf32>
    %cst_258 = arith.constant 0.000000e+00 : f32
    %267 = vector.broadcast %cst_258 : f32 to vector<8x32xf32>
    %cst_259 = arith.constant 0.000000e+00 : f32
    %268 = vector.broadcast %cst_259 : f32 to vector<8x32xf32>
    %c9_260 = arith.constant 9 : index
    %c0_261 = arith.constant 0 : index
    %c0_262 = arith.constant 0 : index
    %269 = vector.load %arg4[%c9_260, %c0_261, %c0_262] : memref<12x32x32xf32, #tpu.memory_space<vmem>>, vector<1x32x32xf32>
    %270 = vector.shape_cast %269 : vector<1x32x32xf32> to vector<32x32xf32>
    %cst_263 = arith.constant dense<0.000000e+00> : vector<8x32xf32>
    %271 = tpu.matmul %264, %270, %cst_263 {dimension_numbers = #tpu.dot_dimension_numbers<[1], [0], [0], [1], [0, 0, 1, 1], [], []>} : vector<8x32xf32>, vector<32x32xf32>, vector<8x32xf32> -> vector<8x32xf32>
    %272 = arith.addf %267, %271 : vector<8x32xf32>
    %c9_264 = arith.constant 9 : index
    %c0_265 = arith.constant 0 : index
    %c0_266 = arith.constant 0 : index
    %273 = vector.load %arg6[%c9_264, %c0_265, %c0_266] : memref<12x32x32xf32, #tpu.memory_space<vmem>>, vector<1x32x32xf32>
    %274 = vector.shape_cast %273 : vector<1x32x32xf32> to vector<32x32xf32>
    %cst_267 = arith.constant dense<0.000000e+00> : vector<8x32xf32>
    %275 = tpu.matmul %264, %274, %cst_267 {dimension_numbers = #tpu.dot_dimension_numbers<[1], [0], [0], [1], [0, 0, 1, 1], [], []>} : vector<8x32xf32>, vector<32x32xf32>, vector<8x32xf32> -> vector<8x32xf32>
    %276 = arith.addf %268, %275 : vector<8x32xf32>
    %c10_268 = arith.constant 10 : index
    %c0_269 = arith.constant 0 : index
    %c0_270 = arith.constant 0 : index
    %277 = vector.load %arg4[%c10_268, %c0_269, %c0_270] : memref<12x32x32xf32, #tpu.memory_space<vmem>>, vector<1x32x32xf32>
    %278 = vector.shape_cast %277 : vector<1x32x32xf32> to vector<32x32xf32>
    %cst_271 = arith.constant dense<0.000000e+00> : vector<8x32xf32>
    %279 = tpu.matmul %265, %278, %cst_271 {dimension_numbers = #tpu.dot_dimension_numbers<[1], [0], [0], [1], [0, 0, 1, 1], [], []>} : vector<8x32xf32>, vector<32x32xf32>, vector<8x32xf32> -> vector<8x32xf32>
    %280 = arith.addf %272, %279 : vector<8x32xf32>
    %c10_272 = arith.constant 10 : index
    %c0_273 = arith.constant 0 : index
    %c0_274 = arith.constant 0 : index
    %281 = vector.load %arg6[%c10_272, %c0_273, %c0_274] : memref<12x32x32xf32, #tpu.memory_space<vmem>>, vector<1x32x32xf32>
    %282 = vector.shape_cast %281 : vector<1x32x32xf32> to vector<32x32xf32>
    %cst_275 = arith.constant dense<0.000000e+00> : vector<8x32xf32>
    %283 = tpu.matmul %265, %282, %cst_275 {dimension_numbers = #tpu.dot_dimension_numbers<[1], [0], [0], [1], [0, 0, 1, 1], [], []>} : vector<8x32xf32>, vector<32x32xf32>, vector<8x32xf32> -> vector<8x32xf32>
    %284 = arith.addf %276, %283 : vector<8x32xf32>
    %c11_276 = arith.constant 11 : index
    %c0_277 = arith.constant 0 : index
    %c0_278 = arith.constant 0 : index
    %285 = vector.load %arg4[%c11_276, %c0_277, %c0_278] : memref<12x32x32xf32, #tpu.memory_space<vmem>>, vector<1x32x32xf32>
    %286 = vector.shape_cast %285 : vector<1x32x32xf32> to vector<32x32xf32>
    %cst_279 = arith.constant dense<0.000000e+00> : vector<8x32xf32>
    %287 = tpu.matmul %266, %286, %cst_279 {dimension_numbers = #tpu.dot_dimension_numbers<[1], [0], [0], [1], [0, 0, 1, 1], [], []>} : vector<8x32xf32>, vector<32x32xf32>, vector<8x32xf32> -> vector<8x32xf32>
    %288 = arith.addf %280, %287 : vector<8x32xf32>
    %c11_280 = arith.constant 11 : index
    %c0_281 = arith.constant 0 : index
    %c0_282 = arith.constant 0 : index
    %289 = vector.load %arg6[%c11_280, %c0_281, %c0_282] : memref<12x32x32xf32, #tpu.memory_space<vmem>>, vector<1x32x32xf32>
    %290 = vector.shape_cast %289 : vector<1x32x32xf32> to vector<32x32xf32>
    %cst_283 = arith.constant dense<0.000000e+00> : vector<8x32xf32>
    %291 = tpu.matmul %266, %290, %cst_283 {dimension_numbers = #tpu.dot_dimension_numbers<[1], [0], [0], [1], [0, 0, 1, 1], [], []>} : vector<8x32xf32>, vector<32x32xf32>, vector<8x32xf32> -> vector<8x32xf32>
    %292 = arith.addf %284, %291 : vector<8x32xf32>
    %c3_284 = arith.constant 3 : index
    %c0_285 = arith.constant 0 : index
    %c0_286 = arith.constant 0 : index
    %293 = vector.load %arg5[%c3_284, %c0_285, %c0_286] : memref<4x1x32xf32, #tpu.memory_space<vmem>>, vector<1x1x32xf32>
    %294 = vector.shape_cast %293 : vector<1x1x32xf32> to vector<1x32xf32>
    %295 = vector.broadcast %294 : vector<1x32xf32> to vector<8x32xf32>
    %296 = arith.addf %288, %295 : vector<8x32xf32>
    %297 = math.tanh %296 : vector<8x32xf32>
    %c3_287 = arith.constant 3 : index
    %c0_288 = arith.constant 0 : index
    %c0_289 = arith.constant 0 : index
    %298 = vector.load %arg7[%c3_287, %c0_288, %c0_289] : memref<4x1x32xf32, #tpu.memory_space<vmem>>, vector<1x1x32xf32>
    %299 = vector.shape_cast %298 : vector<1x1x32xf32> to vector<1x32xf32>
    %300 = vector.broadcast %299 : vector<1x32xf32> to vector<8x32xf32>
    %301 = arith.addf %292, %300 : vector<8x32xf32>
    %302 = arith.negf %301 : vector<8x32xf32>
    %303 = math.exp %302 : vector<8x32xf32>
    %cst_290 = arith.constant 1.000000e+00 : f32
    %304 = vector.broadcast %cst_290 : f32 to vector<8x32xf32>
    %305 = arith.addf %304, %303 : vector<8x32xf32>
    %306 = arith.divf %304, %305 : vector<8x32xf32>
    %307 = arith.mulf %297, %306 : vector<8x32xf32>
    %c3_291 = arith.constant 3 : index
    %c0_292 = arith.constant 0 : index
    %c0_293 = arith.constant 0 : index
    %308 = vector.load %arg8[%c3_291, %c0_292, %c0_293] : memref<4x32x32xf32, #tpu.memory_space<vmem>>, vector<1x32x32xf32>
    %309 = vector.shape_cast %308 : vector<1x32x32xf32> to vector<32x32xf32>
    %cst_294 = arith.constant dense<0.000000e+00> : vector<8x32xf32>
    %310 = tpu.matmul %307, %309, %cst_294 {dimension_numbers = #tpu.dot_dimension_numbers<[1], [0], [0], [1], [0, 0, 1, 1], [], []>} : vector<8x32xf32>, vector<32x32xf32>, vector<8x32xf32> -> vector<8x32xf32>
    %c3_295 = arith.constant 3 : index
    %c0_296 = arith.constant 0 : index
    %c0_297 = arith.constant 0 : index
    %311 = vector.load %arg9[%c3_295, %c0_296, %c0_297] : memref<4x1x32xf32, #tpu.memory_space<vmem>>, vector<1x1x32xf32>
    %312 = vector.shape_cast %311 : vector<1x1x32xf32> to vector<1x32xf32>
    %313 = vector.broadcast %312 : vector<1x32xf32> to vector<8x32xf32>
    %314 = arith.addf %310, %313 : vector<8x32xf32>
    %315 = arith.addf %314, %241 : vector<8x32xf32>
    %316 = tpu.transpose %315, [1, 0] : vector<8x32xf32> -> vector<32x8xf32>
    %c0_298 = arith.constant 0 : index
    %c0_299 = arith.constant 0 : index
    %c0_300 = arith.constant 0 : index
    %317 = vector.load %arg13[%c0_298, %c0_299, %c0_300] : memref<1x32x8xf32, #tpu.memory_space<vmem>>, vector<1x32x8xf32>
    %318 = vector.shape_cast %317 : vector<1x32x8xf32> to vector<32x8xf32>
    %319 = vector.shape_cast %316 : vector<32x8xf32> to vector<1x32x8xf32>
    tpu.vector_store %arg13[%c0_298, %c0_299, %c0_300], %319 {strides = array<i32>} : memref<1x32x8xf32, #tpu.memory_space<vmem>>, vector<1x32x8xf32>,
    %c1_301 = arith.constant 1 : index
    %c0_302 = arith.constant 0 : index
    %320 = vector.load %arg15[%c1_301, %c0_302] : memref<18x32xf32, #tpu.memory_space<vmem>>, vector<8x32xf32>
    tpu.vector_store %arg15[%c1_301, %c0_302], %315 {strides = array<i32>} : memref<18x32xf32, #tpu.memory_space<vmem>>, vector<8x32xf32>,
    %c1_303 = arith.constant 1 : index
    %c0_304 = arith.constant 0 : index
    %321 = tpu.strided_load %arg15[%c1_303, %c0_304] {strides = array<i32: 2, 1>} : memref<18x32xf32, #tpu.memory_space<vmem>>, vector<4x32xf32>
    %c1_305 = arith.constant 1 : index
    %c0_306 = arith.constant 0 : index
    %c0_307 = arith.constant 0 : index
    %322 = vector.load %arg10[%c1_305, %c0_306, %c0_307] : memref<2x32x32xf32, #tpu.memory_space<vmem>>, vector<1x32x32xf32>
    %323 = vector.shape_cast %322 : vector<1x32x32xf32> to vector<32x32xf32>
    %cst_308 = arith.constant dense<0.000000e+00> : vector<4x32xf32>
    %324 = tpu.matmul %321, %323, %cst_308 {dimension_numbers = #tpu.dot_dimension_numbers<[1], [0], [0], [1], [0, 0, 1, 1], [], []>} : vector<4x32xf32>, vector<32x32xf32>, vector<4x32xf32> -> vector<4x32xf32>
    %c1_309 = arith.constant 1 : index
    %c0_310 = arith.constant 0 : index
    %c0_311 = arith.constant 0 : index
    %325 = vector.load %arg11[%c1_309, %c0_310, %c0_311] : memref<2x1x32xf32, #tpu.memory_space<vmem>>, vector<1x1x32xf32>
    %326 = vector.shape_cast %325 : vector<1x1x32xf32> to vector<1x32xf32>
    %327 = vector.broadcast %326 : vector<1x32xf32> to vector<4x32xf32>
    %328 = arith.addf %324, %327 : vector<4x32xf32>
    %329 = tpu.transpose %328, [1, 0] : vector<4x32xf32> -> vector<32x4xf32>
    %c0_312 = arith.constant 0 : index
    %c0_313 = arith.constant 0 : index
    %c0_314 = arith.constant 0 : index
    %330 = vector.load %arg14[%c0_312, %c0_313, %c0_314] : memref<1x32x4xf32, #tpu.memory_space<vmem>>, vector<1x32x4xf32>
    %331 = vector.shape_cast %330 : vector<1x32x4xf32> to vector<32x4xf32>
    %332 = vector.shape_cast %329 : vector<32x4xf32> to vector<1x32x4xf32>
    tpu.vector_store %arg14[%c0_312, %c0_313, %c0_314], %332 {strides = array<i32>} : memref<1x32x4xf32, #tpu.memory_space<vmem>>, vector<1x32x4xf32>,
    return
  }
  func.func @transform_0(%arg0: i32) -> (i32, i32, i32) {
    %c0_i32 = arith.constant 0 : i32
    %c0_i32_0 = arith.constant 0 : i32
    %c0_i32_1 = arith.constant 0 : i32
    return %arg0, %c0_i32, %c0_i32_0 : i32, i32, i32
  }
  func.func @transform_1(%arg0: i32) -> (i32, i32, i32) {
    %c0_i32 = arith.constant 0 : i32
    %c0_i32_0 = arith.constant 0 : i32
    %c0_i32_1 = arith.constant 0 : i32
    %c0_i32_2 = arith.constant 0 : i32
    return %c0_i32, %c0_i32_0, %c0_i32_1 : i32, i32, i32
  }
  func.func @transform_2(%arg0: i32) -> (i32, i32, i32) {
    %c0_i32 = arith.constant 0 : i32
    %c0_i32_0 = arith.constant 0 : i32
    %c0_i32_1 = arith.constant 0 : i32
    %c0_i32_2 = arith.constant 0 : i32
    return %c0_i32, %c0_i32_0, %c0_i32_1 : i32, i32, i32
  }
  func.func @transform_3(%arg0: i32) -> (i32, i32, i32) {
    %c0_i32 = arith.constant 0 : i32
    %c0_i32_0 = arith.constant 0 : i32
    %c0_i32_1 = arith.constant 0 : i32
    %c0_i32_2 = arith.constant 0 : i32
    return %c0_i32, %c0_i32_0, %c0_i32_1 : i32, i32, i32
  }
  func.func @transform_4(%arg0: i32) -> (i32, i32, i32) {
    %c0_i32 = arith.constant 0 : i32
    %c0_i32_0 = arith.constant 0 : i32
    %c0_i32_1 = arith.constant 0 : i32
    %c0_i32_2 = arith.constant 0 : i32
    return %c0_i32, %c0_i32_0, %c0_i32_1 : i32, i32, i32
  }
  func.func @transform_5(%arg0: i32) -> (i32, i32, i32) {
    %c0_i32 = arith.constant 0 : i32
    %c0_i32_0 = arith.constant 0 : i32
    %c0_i32_1 = arith.constant 0 : i32
    %c0_i32_2 = arith.constant 0 : i32
    return %c0_i32, %c0_i32_0, %c0_i32_1 : i32, i32, i32
  }
  func.func @transform_6(%arg0: i32) -> (i32, i32, i32) {
    %c0_i32 = arith.constant 0 : i32
    %c0_i32_0 = arith.constant 0 : i32
    %c0_i32_1 = arith.constant 0 : i32
    %c0_i32_2 = arith.constant 0 : i32
    return %c0_i32, %c0_i32_0, %c0_i32_1 : i32, i32, i32
  }
  func.func @transform_7(%arg0: i32) -> (i32, i32, i32) {
    %c0_i32 = arith.constant 0 : i32
    %c0_i32_0 = arith.constant 0 : i32
    %c0_i32_1 = arith.constant 0 : i32
    %c0_i32_2 = arith.constant 0 : i32
    return %c0_i32, %c0_i32_0, %c0_i32_1 : i32, i32, i32
  }
  func.func @transform_8(%arg0: i32) -> (i32, i32, i32) {
    %c0_i32 = arith.constant 0 : i32
    %c0_i32_0 = arith.constant 0 : i32
    %c0_i32_1 = arith.constant 0 : i32
    %c0_i32_2 = arith.constant 0 : i32
    return %c0_i32, %c0_i32_0, %c0_i32_1 : i32, i32, i32
  }
  func.func @transform_9(%arg0: i32) -> (i32, i32, i32) {
    %c0_i32 = arith.constant 0 : i32
    %c0_i32_0 = arith.constant 0 : i32
    %c0_i32_1 = arith.constant 0 : i32
    %c0_i32_2 = arith.constant 0 : i32
    return %c0_i32, %c0_i32_0, %c0_i32_1 : i32, i32, i32
  }
  func.func @transform_10(%arg0: i32) -> (i32, i32, i32) {
    %c0_i32 = arith.constant 0 : i32
    %c0_i32_0 = arith.constant 0 : i32
    %c0_i32_1 = arith.constant 0 : i32
    %c0_i32_2 = arith.constant 0 : i32
    return %c0_i32, %c0_i32_0, %c0_i32_1 : i32, i32, i32
  }
  func.func @transform_11(%arg0: i32) -> (i32, i32, i32) {
    %c0_i32 = arith.constant 0 : i32
    %c0_i32_0 = arith.constant 0 : i32
    %c0_i32_1 = arith.constant 0 : i32
    return %arg0, %c0_i32, %c0_i32_0 : i32, i32, i32
  }
  func.func @transform_12(%arg0: i32) -> (i32, i32, i32) {
    %c0_i32 = arith.constant 0 : i32
    %c0_i32_0 = arith.constant 0 : i32
    %c0_i32_1 = arith.constant 0 : i32
    return %arg0, %c0_i32, %c0_i32_0 : i32, i32, i32
  }
  func.func @transform_13(%arg0: i32) -> (i32, i32, i32) {
    %c0_i32 = arith.constant 0 : i32
    %c0_i32_0 = arith.constant 0 : i32
    %c0_i32_1 = arith.constant 0 : i32
    return %arg0, %c0_i32, %c0_i32_0 : i32, i32, i32
  }
}

</mosaic_0001>

<bundles_post_ra>
// kernel: encoder_forward_pallas.1
= control target key start
LH: loop header
LB: loop body
LE: loop exit
PB: predicated region body
PF: predicated region fallthrough
CT: control target
= control target key end

     0   :  { %19 = vsyncpa [#allocation4], 0  ;;  %s6060_s0 = inlined_call_operand.vmem [shape: f32[2,32,16], index: 0, kind: input, shape index: {}]   ;;  %s6061_s1 = inlined_call_operand.hbm [shape: f32[12,32,32], index: 1, kind: input, shape index: {}]   ;;  %s6062_s2 = inlined_call_operand.vmem [shape: f32[4,1,32], index: 2, kind: input, shape index: {}]   ;;  %s6063_s3 = inlined_call_operand.hbm [shape: f32[12,32,32], index: 3, kind: input, shape index: {}]   ;;  %s6064_s4 = inlined_call_operand.vmem [shape: f32[4,1,32], index: 4, kind: input, shape index: {}]   ;;  %s6065_s5 = inlined_call_operand.hbm [shape: f32[12,32,32], index: 5, kind: input, shape index: {}]   ;;  %s6066_s6 = inlined_call_operand.vmem [shape: f32[4,1,32], index: 6, kind: input, shape index: {}]   ;;  %s6067_s7 = inlined_call_operand.hbm [shape: f32[4,32,32], index: 7, kind: input, shape index: {}]   ;;  %s6068_s8 = inlined_call_operand.vmem [shape: f32[4,1,32], index: 8, kind: input, shape index: {}]   ;;  %s6069_s9 = inlined_call_operand.vmem [shape: f32[2,32,32], index: 9, kind: input, shape index: {}]   ;;  %s6070_s10 = inlined_call_operand.vmem [shape: f32[2,1,32], index: 10, kind: input, shape index: {}]   ;;  %s6071_s11 = inlined_call_operand.vmem [shape: f32[2,32,16], index: 11, kind: output, shape index: {0}]   ;;  %s6072_s12 = inlined_call_operand.vmem [shape: f32[2,32,8], index: 12, kind: output, shape index: {1}]   ;;  %s6073_s13 = inlined_call_operand.vmem [shape: f32[2,32,4], index: 13, kind: output, shape index: {2}]  }
   0x1   :  { %20 = vsyncpa [#allocation6], 0 }
   0x2   :  { %21 = vsyncpa [#allocation9], 0  ;;  %s5614_s25 = smov 0  }
   0x3 LB: > { %s5620_s26 = sadd.s32 4294967295, %s5534_s25   ;;  %p4503_p0 = scmp.ge.s32.totalorder %s5534_s25, 1  ;;  %s5534_s25 = sphi %s5614_s25, %s27_s25  }
   0x4   : > { %p346_p1 = scmp.lt.s32.totalorder %s5534_s25, 3  ;;  %p5352_p2 = scmp.eq.s32.totalorder %s5620_s26, 0 }
   0x5   : > { %s5536_s28 = smov [#allocation5]   ;;  %s5537_s30 = smov [#allocation3]  }
   0x6   : > { %p5625_p3 = pnand %p4503_p0, %p346_p1  ;;  %s374_s29 = sshll.u32 %s5536_s28, 4  ;;  %s375_s29 = int_to_ptr.vmem [resolvable:$true] %s374_s29 }
   0x7   : > { %s358_s14 = sshll.u32 %s5537_s30, 4  ;;  %s5538_s16 = smov [#allocation7]   ;;  %s5631_s14 = int_to_ptr.vmem [resolvable:$true] %s358_s14 }
   0x8   : > { %p5339_p4 = pneg %p5625_p3  ;;  %s390_s17 = sshll.u32 %s5538_s16, 4  ;;  %s5639_s17 = int_to_ptr.vmem [resolvable:$true] %s390_s17 }
   0x9   : > { %s5539_s18 = smov [#allocation8]   ;;  %s5423_s20 = scalar_lea.vmem %s375_s29, 6144 }
   0xa   : > { %p5635_p5 = pnand %p5352_p2, %p5339_p4  ;;  %s5641_s19 = sshll.u32 %s5539_s18, 4  ;;  %s407_s19 = int_to_ptr.vmem [resolvable:$true] %s5641_s19 }
   0xb   : > { %p5424_p7 = scmp.ne.s32.totalorder %s375_s29, %s5423_s20  ;;  %p5431_p10 = scmp.lt.s32.totalorder %s375_s29, %s375_s29 }
   0xc   : > { %p5414_p6 = pneg %p5635_p5  ;;  %p5432_p11 = scmp.lt.s32.totalorder %s5423_s20, %s5423_s20 }
   0xe   : > { %p5426_p8 = pnand %p5424_p7, %p5414_p6  ;;  %p5433_p12 = por %p5432_p11, %p5431_p10 }
  0x10   : > { %p5427_p9 = pneg %p5426_p8 }
  0x12   : > { %p5434_p13 = pnand %p5433_p12, %p5427_p9 }
  0x14   : > { %5437 = shalt.err (!%p5434_p13)
}
  0x15   : > { %s5540_s21 = smov 128   ;;  %s5541_s22 = smov 8  }
  0x16   : > { %5345 = dma.hbm_to_vmem [thread:$0]  (!%p5635_p5), %s6063_s3, 6144, %s375_s29, [#allocation6], %s5540_s21, %s5540_s21, %s5541_s22  }
  0x17   : > { %s5449_s28 = scalar_lea.vmem %s5631_s14, 6144  ;;  %p5457_p7 = scmp.lt.s32.totalorder %s5631_s14, %s5631_s14 }
  0x18   : > { %p5450_p0 = scmp.ne.s32.totalorder %s5631_s14, %s5449_s28  ;;  %p5458_p8 = scmp.lt.s32.totalorder %s5449_s28, %s5449_s28 }
  0x1a   : > { %p5452_p1 = pnand %p5450_p0, %p5414_p6  ;;  %p5459_p9 = por %p5458_p8, %p5457_p7 }
  0x1c   : > { %p5453_p4 = pneg %p5452_p1 }
  0x1e   : > { %p5460_p10 = pnand %p5459_p9, %p5453_p4 }
  0x20   : > { %5463 = shalt.err (!%p5460_p10)
}
  0x21   : > { %5342 = dma.hbm_to_vmem [thread:$0]  (!%p5635_p5), %s6061_s1, 6144, %s5631_s14, [#allocation4], %s5540_s21, %s5540_s21, %s5541_s22  }
  0x22   : > { %s5475_s16 = scalar_lea.vmem %s5639_s17, 6144  ;;  %p5483_p0 = scmp.lt.s32.totalorder %s5639_s17, %s5639_s17 }
  0x23   : > { %p5476_p11 = scmp.ne.s32.totalorder %s5639_s17, %s5475_s16  ;;  %p5484_p1 = scmp.lt.s32.totalorder %s5475_s16, %s5475_s16 }
  0x25   : > { %p5478_p12 = pnand %p5476_p11, %p5414_p6  ;;  %p5485_p4 = por %p5484_p1, %p5483_p0 }
  0x27   : > { %p5479_p13 = pneg %p5478_p12 }
  0x29   : > { %p5486_p7 = pnand %p5485_p4, %p5479_p13 }
  0x2b   : > { %5489 = shalt.err (!%p5486_p7)
}
  0x2c   : > { %5348 = dma.hbm_to_vmem [thread:$0]  (!%p5635_p5), %s6065_s5, 6144, %s5639_s17, [#allocation6], %s5540_s21, %s5540_s21, %s5541_s22  }
  0x2d   : > { %s5501_s20 = scalar_lea.vmem %s407_s19, 2048  ;;  %p5509_p11 = scmp.lt.s32.totalorder %s407_s19, %s407_s19 }
  0x2e   : > { %p5502_p8 = scmp.ne.s32.totalorder %s407_s19, %s5501_s20  ;;  %p5510_p12 = scmp.lt.s32.totalorder %s5501_s20, %s5501_s20 }
  0x30   : > { %p5504_p9 = pnand %p5502_p8, %p5414_p6  ;;  %p5511_p13 = por %p5510_p12, %p5509_p11 }
  0x32   : > { %p5505_p10 = pneg %p5504_p9 }
  0x34   : > { %p5512_p0 = pnand %p5511_p13, %p5505_p10 }
  0x36   : > { %5515 = shalt.err (!%p5512_p0)
}
  0x37   : > { %5351 = dma.hbm_to_vmem [thread:$0]  (!%p5635_p5), %s6067_s7, 2048, %s407_s19, [#allocation9], %s5540_s21, %s5540_s21, %s5541_s22  }
  0x38   : > { %439 = sbr.rel (%p5625_p3) target bundleno = 3440 (0xd70), region = 64 }
  0x3d   : > { %5521 = dma.done.wait (%p5352_p2), [#allocation4], 6144  }
  0x3e   : > { %5523 = vsyncadd (%p5352_p2), [#allocation4], 4294961152 }
  0x3f   : > { %5525 = dma.done.wait (%p5352_p2), [#allocation6], 12288  }
  0x40   : > { %5527 = vsyncadd (%p5352_p2), [#allocation6], 4294955008 }
  0x41   : > { %5529 = dma.done.wait (%p5352_p2), [#allocation9], 2048  }
  0x42   : > { %5531 = vsyncadd (%p5352_p2), [#allocation9], 4294965248  ;;  %p505_p3 = scmp.lt.s32.totalorder %s5620_s26, 1  ;;  %vm525_vm0 = vcmask 261120   ;;  %v5542_v0 = vmov 0.0   ;;  %vm528_vm1 = vcmask 254976  }
  0x43   : > { %526 = vst.msk [vmem:[#allocation2] sm:$0xff] %vm525_vm0, %v5542_v0  ;;  %527 = vst.msk [vmem:[#allocation2 + $0x8] sm:$0xff] %vm525_vm0, %v5542_v0  ;;  %v582_v2 = vld [vmem:[#allocation3 + $0x38] sm:$0xff]  ;;  %v581_v5 = vld [vmem:[#allocation3 + $0x30] sm:$0xff]  ;;  %vm5543_vm2 = vmmov 0   ;;  %vm2523_vm3 = vcmask 253952  }
  0x44   : > { %s6077_s26 = smov (!%p505_p3, %s5620_s26), 1  ;;  %529 = vst.msk [vmem:[#allocation2 + $0x10] sm:$0x3] %vm528_vm1, %v5542_v0  ;;  %v577_v3 = vld [vmem:[#allocation3 + $0x18] sm:$0xff]  ;;  %4861 = vmatprep.subr.mxu0 %v582_v2  ;;  %v576_v6 = vld [vmem:[#allocation3 + $0x10] sm:$0xff]  ;;  %v580_v7 = vld [vmem:[#allocation3 + $0x28] sm:$0xff] }
  0x45   : > { %s5720_s27 = sshll.u32 %s6077_s26, 5  ;;  %4872 = vmatprep.subr.mxu1 %v577_v3  ;;  %4862 = vmatpush3.msra.mxu0 %v582_v2  ;;  %v575_v8 = vld [vmem:[#allocation3 + $0x8] sm:$0xff]  ;;  %v579_v10 = vld [vmem:[#allocation3 + $0x20] sm:$0xff]  ;;  %v749_v12 = vld [vmem:[#allocation3 + $0x58] sm:$0xff]  ;;  %vm2430_vm4 = vcmask 130048   ;;  %vm4209_vm5 = vcmask 64512  }
  0x46   : > { %s5726_s19 = scalar_lea.vmem %s6060_s0, %s5720_s27  ;;  %4873 = vmatpush3.msra.mxu1 %v577_v3  ;;  %4863 = vmatprep.subr.mxu0 %v581_v5  ;;  %v574_v11 = vld [vmem:[#allocation3] sm:$0xff]  ;;  %v748_v18 = vld [vmem:[#allocation3 + $0x50] sm:$0xff]  ;;  %v747_v22 = vld [vmem:[#allocation3 + $0x48] sm:$0xff]  ;;  %s514_s18 = scalar_lea.vmem %s6071_s11, %s5720_s27  ;;  %vm4334_vm6 = vcmask 31744  }
  0x47   : > { %v530_v1 = vld [vmem:[%s5726_s19] sm:$0xff]  ;;  %v531_v4 = vld [vmem:[%s5726_s19 + $0x8] sm:$0xff]  ;;  %4874 = vmatprep.subr.mxu1 %v576_v6  ;;  %4864 = vmatpush3.msra.mxu0 %v581_v5  ;;  %v532_v9 = vld [vmem:[%s5726_s19 + $0x10] sm:$0xff]  ;;  %s519_s23 = scalar_lea.vmem %s6072_s12, %s5720_s27  ;;  %s524_s26 = scalar_lea.vmem %s6073_s13, %s5720_s27 }
  0x48   : > { %534 = vxpose.xlu0.b32.start [1/4] (short) (narrow) %v530_v1, 16  ;;  %4865 = vmatprep.subr.mxu0 %v580_v7  ;;  %v533_v13 = vld [vmem:[%s5726_s19 + $0x18] sm:$0xff]  ;;  %v862_v25 = vld [vmem:[#allocation5 + $0x38] sm:$0xff]  ;;  %v861_v27 = vld [vmem:[#allocation5 + $0x30] sm:$0xff] }
  0x49   : > { %4875 = vmatpush3.msra.mxu1 %v576_v6  ;;  %4866 = vmatpush3.msra.mxu0 %v580_v7  ;;  %v746_v23 = vld [vmem:[#allocation3 + $0x40] sm:$0xff]  ;;  %v853_v26 = vld [vmem:[#allocation5 + $0x18] sm:$0xff]  ;;  %v852_v28 = vld [vmem:[#allocation5 + $0x10] sm:$0xff] }
  0x4a   : > { %4876 = vmatprep.subr.mxu1 %v575_v8  ;;  %4867 = vmatprep.subr.mxu0 %v579_v10  ;;  %v860_v29 = vld [vmem:[#allocation5 + $0x28] sm:$0xff]  ;;  %v859_v31 = vld [vmem:[#allocation5 + $0x20] sm:$0xff]  ;;  %v1029_v33 = vld [vmem:[#allocation7 + $0x38] sm:$0xff] }
  0x4b   : > { %4877 = vmatpush3.msra.mxu1 %v575_v8  ;;  %4868 = vmatpush3.msra.mxu0 %v579_v10  ;;  %v851_v30 = vld [vmem:[#allocation5 + $0x8] sm:$0xff]  ;;  %v850_v32 = vld [vmem:[#allocation5] sm:$0xff]  ;;  %v857_v34 = vld [vmem:[#allocation7 + $0x18] sm:$0xff] }
  0x4c   : > { %535 = vxpose.xlu0.b32.cont [2/4] (short) (narrow) %v531_v4, 16  ;;  %4878 = vmatprep.subr.mxu1 %v574_v11  ;;  %v4528_v41 = vld [vmem:[%s6062_s2] ss:$0 sm:$0xff]  ;;  %v1028_v52 = vld [vmem:[#allocation7 + $0x30] sm:$0xff]  ;;  %v1026_v56 = vld [vmem:[#allocation7 + $0x20] sm:$0xff] }
  0x4d   : > { %4883 = vmatprep.subr.mxu0 %v749_v12  ;;  %4879 = vmatpush3.msra.mxu1 %v574_v11  ;;  %v856_v53 = vld [vmem:[#allocation7 + $0x10] sm:$0xff]  ;;  %v1027_v54 = vld [vmem:[#allocation7 + $0x28] sm:$0xff]  ;;  %v854_v57 = vld [vmem:[#allocation7] sm:$0xff] }
  0x4e   : > { %4894 = vmatprep.subr.mxu1 %v862_v25  ;;  %v855_v55 = vld [vmem:[#allocation7 + $0x8] sm:$0xff]  ;;  %v1184_v58 = vld [vmem:[#allocation5 + $0x58] sm:$0xff]  ;;  %v1183_v61 = vld [vmem:[#allocation5 + $0x50] sm:$0xff] }
  0x4f   : > { %v1272_v59 = vld [vmem:[#allocation7 + $0x58] sm:$0xff]  ;;  %v1271_v62 = vld [vmem:[#allocation7 + $0x50] sm:$0xff]  ;;  %v1182_v63 = vld [vmem:[#allocation5 + $0x48] sm:$0xff] }
  0x50   : > { %536 = vxpose.xlu0.b32.cont [3/4] (short) (narrow) %v532_v9, 16  ;;  %v1270_v1 = vld [vmem:[#allocation7 + $0x48] sm:$0xff]  ;;  %v1181_v2 = vld [vmem:[#allocation5 + $0x40] sm:$0xff]  ;;  %v1387_v5 = vld [vmem:[#allocation8 + $0x18] sm:$0xff] }
  0x51   : > { %v1269_v3 = vld [vmem:[#allocation7 + $0x40] sm:$0xff]  ;;  %v1386_v6 = vld [vmem:[#allocation8 + $0x10] sm:$0xff]  ;;  %v1385_v7 = vld [vmem:[#allocation8 + $0x8] sm:$0xff] }
  0x52   : > { %v1384_v8 = vld [vmem:[#allocation8] sm:$0xff] }
  0x54   : > { %537 = vxpose.xlu0.b32.end [4/4] (short) (narrow) %v533_v13, 16 }
  0xc4   : > { %v5733_v14 = vpop.trf.xlu0 }
  0xc5   : > { %566 = vst.msk [vmem:[#allocation2 + $0x1] sm:$0xff] %vm525_vm0, %v5733_v14 }
  0xc8   : > { %v5737_v15 = vpop.trf.xlu0 }
  0xc9   : > { %567 = vst.msk [vmem:[#allocation2 + $0x9] sm:$0xff] %vm525_vm0, %v5737_v15 }
  0xcc   : > { %v570_v16 = vld [vmem:[#allocation2 + $0x1] sm:$0xff] }
  0xcd   : > { %v568_v17 = vld [vmem:[#allocation2] sm:$0xff]  ;;  %4869 = vmatprep.mubr.msk.f32.mxu0 %vm525_vm0, %v570_v16 }
  0xce   : > { %4880 = vmatprep.mubr.msk.f32.mxu1 %vm525_vm0, %v568_v17 }
  0xd0   : > { %v569_v19 = vld [vmem:[#allocation2 + $0x8] sm:$0xff] }
  0xd1   : > { %v572_v20 = vld [vmem:[#allocation2 + $0x2] sm:$0xff]  ;;  %4881 = vmatmul.mubr.msk.f32.vlgmr.msra.gmra.mxu1 %vm525_vm0, %v569_v19  ;;  %v573_v24 = vld [vmem:[#allocation2 + $0xa] sm:$0xff] }
  0xd2   : > { %v571_v21 = vld [vmem:[#allocation2 + $0x9] sm:$0xff]  ;;  %4895 = vmatpush3.msra.mxu1 %v862_v25 }
  0xd3   : > { %4870 = vmatmul.mubr.msk.f32.vlgmr.msra.gmra.mxu0 %vm525_vm0, %v571_v21  ;;  %4896 = vmatprep.subr.mxu1 %v861_v27  ;;  %v4542_v21 = vld [vmem:[%s6066_s6] ss:$0 sm:$0xff] }
  0xd4   : > { %4884 = vmatpush3.msra.mxu0 %v749_v12  ;;  %4891 = vmatprep.mubr.msk.f32.mxu0 %vm525_vm0, %v572_v20 }
  0xd5   : > { %4885 = vmatprep.subr.mxu0 %v748_v18  ;;  %4897 = vmatpush3.msra.mxu1 %v861_v27 }
  0xd6   : > { %4886 = vmatpush3.msra.mxu0 %v748_v18  ;;  %4898 = vmatprep.subr.mxu1 %v860_v29 }
  0xd7   : > { %4887 = vmatprep.subr.mxu0 %v747_v22  ;;  %4899 = vmatpush3.msra.mxu1 %v860_v29 }
  0xd8   : > { %4888 = vmatpush3.msra.mxu0 %v747_v22  ;;  %4900 = vmatprep.subr.mxu1 %v859_v31 }
  0xd9   : > { %4889 = vmatprep.subr.mxu0 %v746_v23  ;;  %4901 = vmatpush3.msra.mxu1 %v859_v31 }
  0xda   : > { %4890 = vmatpush3.msra.mxu0 %v746_v23  ;;  %4916 = vmatprep.subr.mxu1 %v1029_v33 }
  0xdb   : > { %4892 = vmatmul.mubr.msk.f32.vlgmr.msra.gmra.mxu0 %vm525_vm0, %v573_v24  ;;  %4905 = vmatprep.subr.mxu0 %v853_v26 }
  0xdc   : > { %4906 = vmatpush3.msra.mxu0 %v853_v26 }
  0xdd   : > { %4907 = vmatprep.subr.mxu0 %v852_v28 }
  0xde   : > { %4908 = vmatpush3.msra.mxu0 %v852_v28 }
  0xdf   : > { %4909 = vmatprep.subr.mxu0 %v851_v30 }
  0xe0   : > { %4910 = vmatpush3.msra.mxu0 %v851_v30 }
  0xe1   : > { %4911 = vmatprep.subr.mxu0 %v850_v32 }
  0xe2   : > { %4912 = vmatpush3.msra.mxu0 %v850_v32 }
  0xe3   : > { %4927 = vmatprep.subr.mxu0 %v857_v34 }
 0x191   : > { %v4882_v36 = vpop.f32.mrf.mxu1 }
 0x193   : > { %v4871_v35 = vpop.f32.mrf.mxu0  ;;  %v736_v38 = vpop.f32.mrf.mxu1 }
 0x194   : > { %v742_v39 = vadd.f32 %v4882_v36, %v4871_v35  ;;  %v4541_v36 = vld [vmem:[%s6064_s4] ss:$0 sm:$0xff] }
 0x195   : > { %v655_v37 = vpop.f32.mrf.mxu0 }
 0x196   : > { %v737_v42 = vadd.f32 %v736_v38, %v655_v37 }
 0x19b   : > { %v4893_v40 = vpop.f32.mrf.mxu0 }
 0x19c   : > { %v832_v43 = vadd.f32 %v4893_v40, %v742_v39 }
 0x19d   : > { %v822_v44 = vpop.f32.mrf.mxu0 }
 0x19e   : > { %v841_v45 = vadd.f32 %v4528_v41, %v832_v43  ;;  %v831_v46 = vadd.f32 %v822_v44, %v737_v42 }
 0x1a0   : > { %843 = vst.msk [vmem:[#allocation2 + $0x9] sm:$0xff] %vm525_vm0, %v841_v45  ;;  %v840_v47 = vadd.f32 %v4528_v41, %v831_v46 }
 0x1a2   : > { %842 = vst.msk [vmem:[#allocation2 + $0x1] sm:$0xff] %vm525_vm0, %v840_v47 }
 0x1a7   : > { %v847_v51 = vld [vmem:[#allocation2 + $0x9] sm:$0xff] }
 0x1a8   : > { %v849_v4 = vld [vmem:[#allocation2 + $0xa] sm:$0xff] }
 0x1a9   : > { %v846_v48 = vld [vmem:[#allocation2 + $0x1] sm:$0xff] }
 0x1aa   : > { %v844_v49 = vld [vmem:[#allocation2] sm:$0xff]  ;;  %v845_v50 = vld [vmem:[#allocation2 + $0x8] sm:$0xff]  ;;  %4902 = vmatprep.mubr.msk.f32.mxu1 %vm525_vm0, %v846_v48 }
 0x1ab   : > { %4913 = vmatprep.mubr.msk.f32.mxu0 %vm525_vm0, %v844_v49  ;;  %4903 = vmatmul.mubr.msk.f32.vlgmr.msra.gmra.mxu1 %vm525_vm0, %v847_v51  ;;  %v848_v60 = vld [vmem:[#allocation2 + $0x2] sm:$0xff] }
 0x1ac   : > { %4914 = vmatmul.mubr.msk.f32.vlgmr.msra.gmra.mxu0 %vm525_vm0, %v845_v50  ;;  %4917 = vmatpush3.msra.mxu1 %v1029_v33 }
 0x1ad   : > { %4928 = vmatpush3.msra.mxu0 %v857_v34  ;;  %4918 = vmatprep.subr.mxu1 %v1028_v52 }
 0x1ae   : > { %4924 = vmatprep.mubr.msk.f32.mxu1 %vm525_vm0, %v846_v48  ;;  %4929 = vmatprep.subr.mxu0 %v856_v53 }
 0x1af   : > { %4935 = vmatprep.mubr.msk.f32.mxu0 %vm525_vm0, %v844_v49  ;;  %4919 = vmatpush3.msra.mxu1 %v1028_v52  ;;  %v1495_v49 = vld [vmem:[#allocation3 + $0x98] sm:$0xff]  ;;  %v1489_v52 = vld [vmem:[#allocation3 + $0x70] sm:$0xff] }
 0x1b0   : > { %4930 = vmatpush3.msra.mxu0 %v856_v53  ;;  %4920 = vmatprep.subr.mxu1 %v1027_v54  ;;  %v1493_v53 = vld [vmem:[#allocation3 + $0x88] sm:$0xff] }
 0x1b1   : > { %4931 = vmatprep.subr.mxu0 %v855_v55  ;;  %4921 = vmatpush3.msra.mxu1 %v1027_v54  ;;  %v1488_v54 = vld [vmem:[#allocation3 + $0x68] sm:$0xff] }
 0x1b2   : > { %4932 = vmatpush3.msra.mxu0 %v855_v55  ;;  %4922 = vmatprep.subr.mxu1 %v1026_v56  ;;  %v1492_v55 = vld [vmem:[#allocation3 + $0x80] sm:$0xff] }
 0x1b3   : > { %4933 = vmatprep.subr.mxu0 %v854_v57  ;;  %4923 = vmatpush3.msra.mxu1 %v1026_v56  ;;  %v1487_v56 = vld [vmem:[#allocation3 + $0x60] sm:$0xff] }
 0x1b4   : > { %4934 = vmatpush3.msra.mxu0 %v854_v57  ;;  %4925 = vmatmul.mubr.msk.f32.vlgmr.msra.gmra.mxu1 %vm525_vm0, %v847_v51  ;;  %v1494_v51 = vld [vmem:[#allocation3 + $0x90] sm:$0xff]  ;;  %v1662_v57 = vld [vmem:[#allocation3 + $0xb8] sm:$0xff] }
 0x1b5   : > { %4936 = vmatmul.mubr.msk.f32.vlgmr.msra.gmra.mxu0 %vm525_vm0, %v845_v50  ;;  %4938 = vmatprep.subr.mxu1 %v1184_v58  ;;  %v1490_v50 = vld [vmem:[#allocation3 + $0x78] sm:$0xff] }
 0x1b6   : > { %4949 = vmatprep.subr.mxu0 %v1272_v59  ;;  %4939 = vmatpush3.msra.mxu1 %v1184_v58  ;;  %v4545_v58 = vld [vmem:[%s6068_s8] ss:$0 sm:$0xff] }
 0x1b7   : > { %4946 = vmatprep.mubr.msk.f32.mxu1 %vm525_vm0, %v848_v60  ;;  %4950 = vmatpush3.msra.mxu0 %v1272_v59 }
 0x1b8   : > { %4957 = vmatprep.mubr.msk.f32.mxu0 %vm525_vm0, %v848_v60  ;;  %4940 = vmatprep.subr.mxu1 %v1183_v61 }
 0x1b9   : > { %4951 = vmatprep.subr.mxu0 %v1271_v62  ;;  %4941 = vmatpush3.msra.mxu1 %v1183_v61 }
 0x1ba   : > { %4952 = vmatpush3.msra.mxu0 %v1271_v62  ;;  %4942 = vmatprep.subr.mxu1 %v1182_v63 }
 0x1bb   : > { %4953 = vmatprep.subr.mxu0 %v1270_v1  ;;  %4943 = vmatpush3.msra.mxu1 %v1182_v63 }
 0x1bc   : > { %4954 = vmatpush3.msra.mxu0 %v1270_v1  ;;  %4944 = vmatprep.subr.mxu1 %v1181_v2 }
 0x1bd   : > { %4955 = vmatprep.subr.mxu0 %v1269_v3  ;;  %4945 = vmatpush3.msra.mxu1 %v1181_v2 }
 0x1be   : > { %4956 = vmatpush3.msra.mxu0 %v1269_v3  ;;  %4947 = vmatmul.mubr.msk.f32.vlgmr.msra.gmra.mxu1 %vm525_vm0, %v849_v4 }
 0x1bf   : > { %4958 = vmatmul.mubr.msk.f32.vlgmr.msra.gmra.mxu0 %vm525_vm0, %v849_v4  ;;  %4960 = vmatprep.subr.mxu1 %v1387_v5 }
 0x1c0   : > { %4961 = vmatpush3.msra.mxu1 %v1387_v5  ;;  %4971 = vmatprep.subr.mxu0 %v1495_v49 }
 0x1c1   : > { %4962 = vmatprep.subr.mxu1 %v1386_v6  ;;  %4972 = vmatpush3.msra.mxu0 %v1495_v49  ;;  %v2098_v49 = vld [vmem:[#allocation5 + $0xa8] sm:$0xff] }
 0x1c2   : > { %4963 = vmatpush3.msra.mxu1 %v1386_v6  ;;  %4973 = vmatprep.subr.mxu0 %v1494_v51 }
 0x1c3   : > { %4964 = vmatprep.subr.mxu1 %v1385_v7  ;;  %4974 = vmatpush3.msra.mxu0 %v1494_v51  ;;  %v2097_v51 = vld [vmem:[#allocation5 + $0xa0] sm:$0xff] }
 0x1c4   : > { %4965 = vmatpush3.msra.mxu1 %v1385_v7  ;;  %4975 = vmatprep.subr.mxu0 %v1493_v53  ;;  %v1659_v7 = vld [vmem:[#allocation3 + $0xa0] sm:$0xff] }
 0x1c5   : > { %4966 = vmatprep.subr.mxu1 %v1384_v8  ;;  %4976 = vmatpush3.msra.mxu0 %v1493_v53 }
 0x1c6   : > { %4967 = vmatpush3.msra.mxu1 %v1384_v8  ;;  %4977 = vmatprep.subr.mxu0 %v1492_v55 }
 0x1c7   : > { %4982 = vmatprep.subr.mxu1 %v1490_v50  ;;  %4978 = vmatpush3.msra.mxu0 %v1492_v55  ;;  %v2305_v55 = vld [vmem:[#allocation8 + $0x30] sm:$0xff] }
 0x1c8   : > { %4993 = vmatprep.subr.mxu0 %v1662_v57 }
 0x26b   : > { %v4904_v9 = vpop.f32.mrf.mxu1 }
 0x26c   : > { %v4915_v10 = vpop.f32.mrf.mxu0 }
 0x26d   : > { %v935_v11 = vpop.f32.mrf.mxu1  ;;  %v1022_v34 = vadd.f32 %v4915_v10, %v4904_v9  ;;  %v1778_v9 = vld [vmem:[#allocation5 + $0x98] sm:$0xff] }
 0x26e   : > { %v1016_v12 = vpop.f32.mrf.mxu0  ;;  %v1768_v10 = vld [vmem:[#allocation5 + $0x78] sm:$0xff] }
 0x26f   : > { %v1017_v32 = vadd.f32 %v1016_v12, %v935_v11  ;;  %v1777_v11 = vld [vmem:[#allocation5 + $0x90] sm:$0xff] }
 0x270   : > { %v1767_v12 = vld [vmem:[#allocation5 + $0x70] sm:$0xff] }
 0x274   : > { %v4926_v13 = vpop.f32.mrf.mxu1 }
 0x275   : > { %v4937_v16 = vpop.f32.mrf.mxu0 }
 0x276   : > { %v1096_v17 = vpop.f32.mrf.mxu1  ;;  %v1177_v19 = vadd.f32 %v4937_v16, %v4926_v13  ;;  %v1776_v13 = vld [vmem:[#allocation5 + $0x88] sm:$0xff] }
 0x277   : > { %v1171_v18 = vpop.f32.mrf.mxu0  ;;  %v1766_v16 = vld [vmem:[#allocation5 + $0x68] sm:$0xff] }
 0x278   : > { %v1172_v22 = vadd.f32 %v1171_v18, %v1096_v17  ;;  %v1775_v17 = vld [vmem:[#allocation5 + $0x80] sm:$0xff] }
 0x279   : > { %v1765_v18 = vld [vmem:[#allocation5 + $0x60] sm:$0xff] }
 0x27e   : > { %v4948_v30 = vpop.f32.mrf.mxu1 }
 0x27f   : > { %v4959_v20 = vpop.f32.mrf.mxu0  ;;  %v1267_v35 = vadd.f32 %v4948_v30, %v1022_v34 }
 0x280   : > { %v1349_v23 = vadd.f32 %v4959_v20, %v1177_v19  ;;  %v1257_v31 = vpop.f32.mrf.mxu1  ;;  %v1945_v19 = vld [vmem:[#allocation7 + $0x98] sm:$0xff] }
 0x281   : > { %v1339_v24 = vpop.f32.mrf.mxu0  ;;  %v1266_v33 = vadd.f32 %v1257_v31, %v1017_v32  ;;  %v1358_v41 = vadd.f32 %v4541_v36, %v1267_v35  ;;  %v1773_v20 = vld [vmem:[#allocation7 + $0x78] sm:$0xff] }
 0x282   : > { %v1369_v25 = vadd.f32 %v4542_v21, %v1349_v23  ;;  %v1348_v26 = vadd.f32 %v1339_v24, %v1172_v22 }
 0x283   : > { %v1357_v37 = vadd.f32 %v4541_v36, %v1266_v33 }
 0x284   : > { %v4544_v27 = vmul.f32 -1.442695, %v1369_v25  ;;  %v1368_v28 = vadd.f32 %v4542_v21, %v1348_v26 }
 0x286   : > { %5376 = vpow2.f32 %v4544_v27  ;;  %v4543_v29 = vmul.f32 -1.442695, %v1368_v28  ;;  %v4555_v27 = vld [vmem:[%s6062_s2 + $0x1] ss:$0 sm:$0xff] }
 0x288   : > { %5378 = vpow2.f32 %v4543_v29 }
 0x289   : > { %5380 = vtanh.f32 %v1357_v37 }
 0x293   : > { %v5377_v38 = vpop.eup %5376 }
 0x294   : > { %v1377_v39 = vadd.f32 1.0, %v5377_v38  ;;  %v1944_v38 = vld [vmem:[#allocation7 + $0x90] sm:$0xff] }
 0x295   : > { %v5379_v40 = vpop.eup %5378 }
 0x296   : > { %v1376_v42 = vadd.f32 1.0, %v5379_v40  ;;  %5382 = vrcp.f32 %v1377_v39  ;;  %v5381_v43 = vpop.eup %5380  ;;  %v1772_v39 = vld [vmem:[#allocation7 + $0x70] sm:$0xff]  ;;  %v1943_v40 = vld [vmem:[#allocation7 + $0x88] sm:$0xff] }
 0x298   : > { %5384 = vrcp.f32 %v1376_v42  ;;  %v1942_v42 = vld [vmem:[#allocation7 + $0x80] sm:$0xff] }
 0x299   : > { %5386 = vtanh.f32 %v1358_v41  ;;  %v1771_v41 = vld [vmem:[#allocation7 + $0x68] sm:$0xff] }
 0x2a3   : > { %v5383_v44 = vpop.eup %5382 }
 0x2a5   : > { %v5385_v45 = vpop.eup %5384 }
 0x2a6   : > { %v5387_v46 = vpop.eup %5386  ;;  %v1382_v47 = vmul.f32 %v5385_v45, %v5381_v43  ;;  %v1770_v43 = vld [vmem:[#allocation7 + $0x60] sm:$0xff]  ;;  %v2188_v45 = vld [vmem:[#allocation7 + $0xb8] sm:$0xff] }
 0x2a7   : > { %v1383_v48 = vmul.f32 %v5387_v46, %v5383_v44  ;;  %v2100_v44 = vld [vmem:[#allocation5 + $0xb8] sm:$0xff] }
 0x2a8   : > { %4968 = vmatprep.mubr.msk.f32.mxu1 %vm525_vm0, %v1382_v47  ;;  %v2099_v47 = vld [vmem:[#allocation5 + $0xb0] sm:$0xff] }
 0x2a9   : > { %4969 = vmatmul.mubr.msk.f32.vlgmr.msra.gmra.mxu1 %vm525_vm0, %v1383_v48  ;;  %v2187_v48 = vld [vmem:[#allocation7 + $0xb0] sm:$0xff] }
 0x2aa   : > { %4983 = vmatpush3.msra.mxu1 %v1490_v50  ;;  %v2186_v50 = vld [vmem:[#allocation7 + $0xa8] sm:$0xff] }
 0x2ab   : > { %4984 = vmatprep.subr.mxu1 %v1489_v52 }
 0x2ac   : > { %4985 = vmatpush3.msra.mxu1 %v1489_v52  ;;  %v2185_v52 = vld [vmem:[#allocation7 + $0xa0] sm:$0xff] }
 0x2ad   : > { %4986 = vmatprep.subr.mxu1 %v1488_v54 }
 0x2ae   : > { %4987 = vmatpush3.msra.mxu1 %v1488_v54  ;;  %v2306_v54 = vld [vmem:[#allocation8 + $0x38] sm:$0xff] }
 0x2af   : > { %4988 = vmatprep.subr.mxu1 %v1487_v56 }
 0x2b0   : > { %4989 = vmatpush3.msra.mxu1 %v1487_v56  ;;  %v2304_v56 = vld [vmem:[#allocation8 + $0x28] sm:$0xff] }
 0x2b1   : > { %5004 = vmatprep.subr.mxu1 %v1778_v9 }
 0x369   : > { %v4970_v59 = vpop.f32.mrf.mxu1 }
 0x36a   : > { %v1473_v60 = vadd.f32 %v4970_v59, %v4545_v58 }
 0x36b   : > { %v1467_v61 = vpop.f32.mrf.mxu1 }
 0x36c   : > { %v5776_v62 = vadd.f32 %v1473_v60, %v5737_v15  ;;  %v1468_v63 = vadd.f32 %v4545_v58, %v1467_v61  ;;  %v1661_v15 = vld [vmem:[#allocation3 + $0xb0] sm:$0xff] }
 0x36e   : > { %1479 = vst.msk [vmem:[#allocation2 + $0x9] sm:$0xff] %vm525_vm0, %v5776_v62  ;;  %v5781_v1 = vadd.f32 %v1468_v63, %v5733_v14  ;;  %v1660_v14 = vld [vmem:[#allocation3 + $0xa8] sm:$0xff] }
 0x370   : > { %1478 = vst.msk [vmem:[#allocation2 + $0x1] sm:$0xff] %vm525_vm0, %v5781_v1 }
 0x375   : > { %v1483_v5 = vld [vmem:[#allocation2 + $0x9] sm:$0xff] }
 0x376   : > { %v1485_v8 = vld [vmem:[#allocation2 + $0xa] sm:$0xff] }
 0x377   : > { %v1482_v2 = vld [vmem:[#allocation2 + $0x1] sm:$0xff] }
 0x378   : > { %v1480_v3 = vld [vmem:[#allocation2] sm:$0xff]  ;;  %v1481_v4 = vld [vmem:[#allocation2 + $0x8] sm:$0xff]  ;;  %4979 = vmatprep.mubr.msk.f32.mxu0 %vm525_vm0, %v1482_v2 }
 0x379   : > { %4990 = vmatprep.mubr.msk.f32.mxu1 %vm525_vm0, %v1480_v3  ;;  %4980 = vmatmul.mubr.msk.f32.vlgmr.msra.gmra.mxu0 %vm525_vm0, %v1483_v5  ;;  %v1484_v6 = vld [vmem:[#allocation2 + $0x2] sm:$0xff] }
 0x37a   : > { %4991 = vmatmul.mubr.msk.f32.vlgmr.msra.gmra.mxu1 %vm525_vm0, %v1481_v4  ;;  %4994 = vmatpush3.msra.mxu0 %v1662_v57  ;;  %v2303_v57 = vld [vmem:[#allocation8 + $0x20] sm:$0xff] }
 0x37b   : > { %5001 = vmatprep.mubr.msk.f32.mxu0 %vm525_vm0, %v1484_v6  ;;  %4995 = vmatprep.subr.mxu0 %v1661_v15  ;;  %v4571_v6 = vld [vmem:[%s6066_s6 + $0x1] ss:$0 sm:$0xff] }
 0x37c   : > { %4996 = vmatpush3.msra.mxu0 %v1661_v15  ;;  %5005 = vmatpush3.msra.mxu1 %v1778_v9 }
 0x37d   : > { %4997 = vmatprep.subr.mxu0 %v1660_v14  ;;  %5006 = vmatprep.subr.mxu1 %v1777_v11 }
 0x37e   : > { %4998 = vmatpush3.msra.mxu0 %v1660_v14  ;;  %5007 = vmatpush3.msra.mxu1 %v1777_v11 }
 0x37f   : > { %4999 = vmatprep.subr.mxu0 %v1659_v7  ;;  %5008 = vmatprep.subr.mxu1 %v1776_v13 }
 0x380   : > { %5000 = vmatpush3.msra.mxu0 %v1659_v7  ;;  %5009 = vmatpush3.msra.mxu1 %v1776_v13 }
 0x381   : > { %5002 = vmatmul.mubr.msk.f32.vlgmr.msra.gmra.mxu0 %vm525_vm0, %v1485_v8  ;;  %5015 = vmatprep.subr.mxu0 %v1768_v10 }
 0x382   : > { %5016 = vmatpush3.msra.mxu0 %v1768_v10  ;;  %5010 = vmatprep.subr.mxu1 %v1775_v17 }
 0x383   : > { %5017 = vmatprep.subr.mxu0 %v1767_v12  ;;  %5011 = vmatpush3.msra.mxu1 %v1775_v17 }
 0x384   : > { %5018 = vmatpush3.msra.mxu0 %v1767_v12  ;;  %5026 = vmatprep.subr.mxu1 %v1945_v19 }
 0x385   : > { %5019 = vmatprep.subr.mxu0 %v1766_v16 }
 0x386   : > { %5020 = vmatpush3.msra.mxu0 %v1766_v16 }
 0x387   : > { %5021 = vmatprep.subr.mxu0 %v1765_v18 }
 0x388   : > { %5022 = vmatpush3.msra.mxu0 %v1765_v18 }
 0x389   : > { %5037 = vmatprep.subr.mxu0 %v1773_v20 }
 0x439   : > { %v4981_v21 = vpop.f32.mrf.mxu0 }
 0x43a   : > { %v4992_v22 = vpop.f32.mrf.mxu1 }
 0x43b   : > { %v1568_v23 = vpop.f32.mrf.mxu0  ;;  %v1655_v25 = vadd.f32 %v4992_v22, %v4981_v21  ;;  %v4569_v22 = vld [vmem:[%s6064_s4 + $0x1] ss:$0 sm:$0xff] }
 0x43c   : > { %v1649_v24 = vpop.f32.mrf.mxu1 }
 0x43d   : > { %v1650_v28 = vadd.f32 %v1649_v24, %v1568_v23 }
 0x441   : > { %v5003_v26 = vpop.f32.mrf.mxu0 }
 0x442   : > { %v1745_v29 = vadd.f32 %v5003_v26, %v1655_v25 }
 0x443   : > { %v1735_v30 = vpop.f32.mrf.mxu0 }
 0x444   : > { %v1755_v31 = vadd.f32 %v4555_v27, %v1745_v29  ;;  %v1744_v32 = vadd.f32 %v1735_v30, %v1650_v28 }
 0x446   : > { %1757 = vst.msk [vmem:[#allocation2 + $0x9] sm:$0xff] %vm525_vm0, %v1755_v31  ;;  %v1754_v33 = vadd.f32 %v4555_v27, %v1744_v32 }
 0x448   : > { %1756 = vst.msk [vmem:[#allocation2 + $0x1] sm:$0xff] %vm525_vm0, %v1754_v33 }
 0x44d   : > { %v1761_v37 = vld [vmem:[#allocation2 + $0x9] sm:$0xff] }
 0x44e   : > { %v1763_v53 = vld [vmem:[#allocation2 + $0xa] sm:$0xff] }
 0x44f   : > { %v1760_v34 = vld [vmem:[#allocation2 + $0x1] sm:$0xff] }
 0x450   : > { %v1758_v35 = vld [vmem:[#allocation2] sm:$0xff]  ;;  %v1759_v36 = vld [vmem:[#allocation2 + $0x8] sm:$0xff]  ;;  %5012 = vmatprep.mubr.msk.f32.mxu1 %vm525_vm0, %v1760_v34 }
 0x451   : > { %5023 = vmatprep.mubr.msk.f32.mxu0 %vm525_vm0, %v1758_v35  ;;  %5013 = vmatmul.mubr.msk.f32.vlgmr.msra.gmra.mxu1 %vm525_vm0, %v1761_v37  ;;  %v1762_v46 = vld [vmem:[#allocation2 + $0x2] sm:$0xff] }
 0x452   : > { %5024 = vmatmul.mubr.msk.f32.vlgmr.msra.gmra.mxu0 %vm525_vm0, %v1759_v36  ;;  %5027 = vmatpush3.msra.mxu1 %v1945_v19 }
 0x453   : > { %5038 = vmatpush3.msra.mxu0 %v1773_v20  ;;  %5028 = vmatprep.subr.mxu1 %v1944_v38 }
 0x454   : > { %5034 = vmatprep.mubr.msk.f32.mxu1 %vm525_vm0, %v1760_v34  ;;  %5039 = vmatprep.subr.mxu0 %v1772_v39 }
 0x455   : > { %5045 = vmatprep.mubr.msk.f32.mxu0 %vm525_vm0, %v1758_v35  ;;  %5029 = vmatpush3.msra.mxu1 %v1944_v38  ;;  %v2442_v35 = vld [vmem:[%s6069_s9 + $0x18] sm:$0xff]  ;;  %v2439_v38 = vld [vmem:[%s6069_s9] sm:$0xff] }
 0x456   : > { %5040 = vmatpush3.msra.mxu0 %v1772_v39  ;;  %5030 = vmatprep.subr.mxu1 %v1943_v40  ;;  %v4575_v39 = vld [vmem:[%s6068_s8 + $0x1] ss:$0 sm:$0xff] }
 0x457   : > { %5041 = vmatprep.subr.mxu0 %v1771_v41  ;;  %5031 = vmatpush3.msra.mxu1 %v1943_v40 }
 0x458   : > { %5042 = vmatpush3.msra.mxu0 %v1771_v41  ;;  %5032 = vmatprep.subr.mxu1 %v1942_v42 }
 0x459   : > { %5043 = vmatprep.subr.mxu0 %v1770_v43  ;;  %5033 = vmatpush3.msra.mxu1 %v1942_v42 }
 0x45a   : > { %5044 = vmatpush3.msra.mxu0 %v1770_v43  ;;  %5035 = vmatmul.mubr.msk.f32.vlgmr.msra.gmra.mxu1 %vm525_vm0, %v1761_v37  ;;  %v2440_v37 = vld [vmem:[%s6069_s9 + $0x8] sm:$0xff] }
 0x45b   : > { %5046 = vmatmul.mubr.msk.f32.vlgmr.msra.gmra.mxu0 %vm525_vm0, %v1759_v36  ;;  %5048 = vmatprep.subr.mxu1 %v2100_v44  ;;  %v2441_v36 = vld [vmem:[%s6069_s9 + $0x10] sm:$0xff] }
 0x45c   : > { %5059 = vmatprep.subr.mxu0 %v2188_v45  ;;  %5049 = vmatpush3.msra.mxu1 %v2100_v44 }
 0x45d   : > { %5056 = vmatprep.mubr.msk.f32.mxu1 %vm525_vm0, %v1762_v46  ;;  %5060 = vmatpush3.msra.mxu0 %v2188_v45 }
 0x45e   : > { %5067 = vmatprep.mubr.msk.f32.mxu0 %vm525_vm0, %v1762_v46  ;;  %5050 = vmatprep.subr.mxu1 %v2099_v47 }
 0x45f   : > { %5061 = vmatprep.subr.mxu0 %v2187_v48  ;;  %5051 = vmatpush3.msra.mxu1 %v2099_v47  ;;  %v2538_v47 = vld [vmem:[#allocation3 + $0xf8] sm:$0xff] }
 0x460   : > { %5062 = vmatpush3.msra.mxu0 %v2187_v48  ;;  %5052 = vmatprep.subr.mxu1 %v2098_v49  ;;  %v2533_v48 = vld [vmem:[#allocation3 + $0xd8] sm:$0xff] }
 0x461   : > { %5063 = vmatprep.subr.mxu0 %v2186_v50  ;;  %5053 = vmatpush3.msra.mxu1 %v2098_v49  ;;  %v2537_v49 = vld [vmem:[#allocation3 + $0xf0] sm:$0xff] }
 0x462   : > { %5064 = vmatpush3.msra.mxu0 %v2186_v50  ;;  %5054 = vmatprep.subr.mxu1 %v2097_v51  ;;  %v2531_v50 = vld [vmem:[#allocation3 + $0xc8] sm:$0xff] }
 0x463   : > { %5065 = vmatprep.subr.mxu0 %v2185_v52  ;;  %5055 = vmatpush3.msra.mxu1 %v2097_v51  ;;  %v2535_v51 = vld [vmem:[#allocation3 + $0xe0] sm:$0xff] }
 0x464   : > { %5066 = vmatpush3.msra.mxu0 %v2185_v52  ;;  %5057 = vmatmul.mubr.msk.f32.vlgmr.msra.gmra.mxu1 %vm525_vm0, %v1763_v53  ;;  %v2530_v52 = vld [vmem:[#allocation3 + $0xc0] sm:$0xff] }
 0x465   : > { %5068 = vmatmul.mubr.msk.f32.vlgmr.msra.gmra.mxu0 %vm525_vm0, %v1763_v53  ;;  %5081 = vmatprep.subr.mxu0 %v5542_v0  ;;  %v4578_v53 = vld [vmem:[%s6070_s10] ss:$0 sm:$0xff] }
 0x466   : > { %5070 = vmatprep.subr.mxu1 %v2306_v54  ;;  %5082 = vmatpush3.msra.mxu0 %v2442_v35  ;;  %v3085_v35 = vld [vmem:[#allocation5 + $0x108] sm:$0xff] }
 0x467   : > { %5071 = vmatpush3.msra.mxu1 %v2306_v54  ;;  %5083 = vmatprep.subr.mxu0 %v5542_v0 }
 0x468   : > { %5072 = vmatprep.subr.mxu1 %v2305_v55  ;;  %5084 = vmatpush3.msra.mxu0 %v2441_v36  ;;  %v3164_v36 = vld [vmem:[#allocation7 + $0x108] sm:$0xff] }
 0x469   : > { %5073 = vmatpush3.msra.mxu1 %v2305_v55  ;;  %5085 = vmatprep.subr.mxu0 %v5542_v0 }
 0x46a   : > { %5074 = vmatprep.subr.mxu1 %v2304_v56  ;;  %5086 = vmatpush3.msra.mxu0 %v2440_v37  ;;  %v3084_v37 = vld [vmem:[#allocation5 + $0x100] sm:$0xff] }
 0x46b   : > { %5075 = vmatpush3.msra.mxu1 %v2304_v56  ;;  %5089 = vmatprep.mubr.msk.f32.mxu0 %vm5543_vm2, %v5542_v0 }
 0x46c   : > { %5076 = vmatprep.subr.mxu1 %v2303_v57  ;;  %5087 = vmatprep.subr.mxu0 %v5542_v0 }
 0x46d   : > { %5077 = vmatpush3.msra.mxu1 %v2303_v57  ;;  %5088 = vmatpush3.msra.mxu0 %v2439_v38  ;;  %v2689_v57 = vld [vmem:[#allocation3 + $0x118] sm:$0xff]  ;;  %v3163_v38 = vld [vmem:[#allocation7 + $0x100] sm:$0xff] }
 0x46e   : > { %5092 = vmatprep.subr.mxu1 %v5542_v0  ;;  %5103 = vmatprep.subr.mxu0 %v5542_v0 }
 0x511   : > { %v5014_v58 = vpop.f32.mrf.mxu1 }
 0x512   : > { %v5025_v59 = vpop.f32.mrf.mxu0 }
 0x513   : > { %v1851_v60 = vpop.f32.mrf.mxu1  ;;  %v1938_v20 = vadd.f32 %v5025_v59, %v5014_v58 }
 0x514   : > { %v1932_v61 = vpop.f32.mrf.mxu0 }
 0x515   : > { %v1933_v18 = vadd.f32 %v1932_v61, %v1851_v60  ;;  %v2688_v60 = vld [vmem:[#allocation3 + $0x110] sm:$0xff]  ;;  %v2687_v61 = vld [vmem:[#allocation3 + $0x108] sm:$0xff] }
 0x51a   : > { %v5036_v63 = vpop.f32.mrf.mxu1 }
 0x51b   : > { %v5047_v2 = vpop.f32.mrf.mxu0 }
 0x51c   : > { %v2012_v3 = vpop.f32.mrf.mxu1  ;;  %v2093_v5 = vadd.f32 %v5047_v2, %v5036_v63  ;;  %v2686_v63 = vld [vmem:[#allocation3 + $0x100] sm:$0xff] }
 0x51d   : > { %v2087_v4 = vpop.f32.mrf.mxu0 }
 0x51e   : > { %v2088_v14 = vadd.f32 %v2087_v4, %v2012_v3  ;;  %v2791_v3 = vld [vmem:[#allocation5 + $0xf8] sm:$0xff] }
 0x51f   : > { %v2781_v4 = vld [vmem:[#allocation5 + $0xd8] sm:$0xff] }
 0x524   : > { %v5058_v16 = vpop.f32.mrf.mxu1 }
 0x525   : > { %v5069_v15 = vpop.f32.mrf.mxu0  ;;  %v2183_v21 = vadd.f32 %v5058_v16, %v1938_v20 }
 0x526   : > { %v2265_v7 = vadd.f32 %v5069_v15, %v2093_v5  ;;  %v2173_v17 = vpop.f32.mrf.mxu1  ;;  %v2790_v5 = vld [vmem:[#allocation5 + $0xf0] sm:$0xff] }
 0x527   : > { %v2255_v8 = vpop.f32.mrf.mxu0  ;;  %v2182_v19 = vadd.f32 %v2173_v17, %v1933_v18  ;;  %v2275_v27 = vadd.f32 %v4569_v22, %v2183_v21  ;;  %v2780_v15 = vld [vmem:[#allocation5 + $0xd0] sm:$0xff]  ;;  %v4584_v17 = vld [vmem:[%s6062_s2 + $0x2] ss:$0 sm:$0xff]  ;;  %v2942_v21 = vld [vmem:[#allocation7 + $0xf8] sm:$0xff] }
 0x528   : > { %v2287_v9 = vadd.f32 %v4571_v6, %v2265_v7  ;;  %v2264_v10 = vadd.f32 %v2255_v8, %v2088_v14  ;;  %v2779_v14 = vld [vmem:[#allocation5 + $0xc8] sm:$0xff]  ;;  %v2788_v7 = vld [vmem:[#allocation5 + $0xe0] sm:$0xff] }
 0x529   : > { %v2274_v23 = vadd.f32 %v4569_v22, %v2182_v19  ;;  %v2778_v8 = vld [vmem:[#allocation5 + $0xc0] sm:$0xff]  ;;  %v2786_v22 = vld [vmem:[#allocation7 + $0xd8] sm:$0xff] }
 0x52a   : > { %v4573_v11 = vmul.f32 -1.442695, %v2287_v9  ;;  %v2286_v12 = vadd.f32 %v4571_v6, %v2264_v10  ;;  %v2789_v6 = vld [vmem:[#allocation5 + $0xe8] sm:$0xff] }
 0x52c   : > { %5388 = vpow2.f32 %v4573_v11  ;;  %v4572_v13 = vmul.f32 -1.442695, %v2286_v12 }
 0x52e   : > { %5390 = vpow2.f32 %v4572_v13 }
 0x52f   : > { %5392 = vtanh.f32 %v2274_v23 }
 0x539   : > { %v5389_v24 = vpop.eup %5388 }
 0x53a   : > { %v2295_v25 = vadd.f32 1.0, %v5389_v24 }
 0x53b   : > { %v5391_v26 = vpop.eup %5390 }
 0x53c   : > { %v2294_v28 = vadd.f32 1.0, %v5391_v26  ;;  %5394 = vrcp.f32 %v2295_v25  ;;  %v5393_v29 = vpop.eup %5392  ;;  %v2941_v25 = vld [vmem:[#allocation7 + $0xf0] sm:$0xff] }
 0x53d   : > { %v2785_v26 = vld [vmem:[#allocation7 + $0xd0] sm:$0xff] }
 0x53e   : > { %5396 = vrcp.f32 %v2294_v28  ;;  %v2784_v28 = vld [vmem:[#allocation7 + $0xc8] sm:$0xff] }
 0x53f   : > { %5398 = vtanh.f32 %v2275_v27  ;;  %v2940_v27 = vld [vmem:[#allocation7 + $0xe8] sm:$0xff] }
 0x549   : > { %v5395_v30 = vpop.eup %5394 }
 0x54b   : > { %v5397_v31 = vpop.eup %5396 }
 0x54c   : > { %v5399_v32 = vpop.eup %5398  ;;  %v2300_v33 = vmul.f32 %v5397_v31, %v5393_v29  ;;  %v2939_v29 = vld [vmem:[#allocation7 + $0xe0] sm:$0xff]  ;;  %v3087_v31 = vld [vmem:[#allocation5 + $0x118] sm:$0xff] }
 0x54d   : > { %v2301_v34 = vmul.f32 %v5399_v32, %v5395_v30  ;;  %v2783_v30 = vld [vmem:[#allocation7 + $0xc0] sm:$0xff]  ;;  %v3166_v32 = vld [vmem:[#allocation7 + $0x118] sm:$0xff] }
 0x54e   : > { %5078 = vmatprep.mubr.msk.f32.mxu1 %vm525_vm0, %v2300_v33  ;;  %v3086_v33 = vld [vmem:[#allocation5 + $0x110] sm:$0xff] }
 0x54f   : > { %5079 = vmatmul.mubr.msk.f32.vlgmr.msra.gmra.mxu1 %vm525_vm0, %v2301_v34  ;;  %v3165_v34 = vld [vmem:[#allocation7 + $0x110] sm:$0xff] }
 0x550   : > { %5100 = vmatprep.mubr.msk.f32.mxu1 %vm5543_vm2, %v5542_v0  ;;  %5093 = vmatpush3.msra.mxu1 %v2538_v47 }
 0x551   : > { %5094 = vmatprep.subr.mxu1 %v5542_v0 }
 0x552   : > { %5095 = vmatpush3.msra.mxu1 %v2537_v49 }
 0x553   : > { %5096 = vmatprep.subr.mxu1 %v5542_v0 }
 0x60f   : > { %v5080_v40 = vpop.f32.mrf.mxu1 }
 0x610   : > { %v2393_v41 = vadd.f32 %v5080_v40, %v4575_v39  ;;  %v3268_v40 = vld [vmem:[#allocation8 + $0x58] sm:$0xff] }
 0x611   : > { %v2387_v42 = vpop.f32.mrf.mxu1 }
 0x612   : > { %v2388_v43 = vadd.f32 %v4575_v39, %v2387_v42  ;;  %v2397_v44 = vadd.f32 %v2393_v41, %v5776_v62  ;;  %v2532_v62 = vld [vmem:[#allocation3 + $0xd0] sm:$0xff]  ;;  %v3266_v42 = vld [vmem:[#allocation8 + $0x48] sm:$0xff] }
 0x613   : > { %v3267_v41 = vld [vmem:[#allocation8 + $0x50] sm:$0xff] }
 0x614   : > { %v2396_v45 = vadd.f32 %v2388_v43, %v5781_v1  ;;  %2436 = vst.msk [vmem:[#allocation2 + $0x9] sm:$0xff] %vm525_vm0, %v2397_v44  ;;  %v2536_v1 = vld [vmem:[#allocation3 + $0xe8] sm:$0xff]  ;;  %v3265_v43 = vld [vmem:[#allocation8 + $0x40] sm:$0xff] }
 0x615   : > { %5097 = vmatpush3.msra.mxu1 %v2536_v1 }
 0x616   : > { %2398 = vxpose.xlu1.b32.start [1/2] (short) (narrow) %v2396_v45, 32  ;;  %2435 = vst.msk [vmem:[#allocation2 + $0x1] sm:$0xff] %vm525_vm0, %v2396_v45  ;;  %5098 = vmatprep.subr.mxu1 %v5542_v0 }
 0x617   : > { %5099 = vmatpush3.msra.mxu1 %v2535_v51 }
 0x618   : > { %5114 = vmatprep.subr.mxu1 %v5542_v0 }
 0x61a   : > { %2399 = vxpose.xlu1.b32.end [2/2] (short) (narrow) %v2397_v44, 32 }
 0x61d   : > { %v2438_v46 = vld [vmem:[#allocation2 + $0x1] ss:$2 sm:$0xff] }
 0x61e   : > { %5090 = vmatmul.mubr.msk.f32.vlgmr.msra.gmra.mxu0 %vm525_vm0, %v2438_v46  ;;  %2524 = vst.msk [vmem:[#allocation2 + $0x9] sm:$0x1] %vm2523_vm3, %v5542_v0 }
 0x61f   : > { %5111 = vmatprep.mubr.msk.f32.mxu0 %vm5543_vm2, %v5542_v0  ;;  %5104 = vmatpush3.msra.mxu0 %v2533_v48 }
 0x620   : > { %5105 = vmatprep.subr.mxu0 %v5542_v0 }
 0x621   : > { %5106 = vmatpush3.msra.mxu0 %v2532_v62 }
 0x622   : > { %5107 = vmatprep.subr.mxu0 %v5542_v0 }
 0x623   : > { %5108 = vmatpush3.msra.mxu0 %v2531_v50 }
 0x624   : > { %5109 = vmatprep.subr.mxu0 %v5542_v0 }
 0x625   : > { %5110 = vmatpush3.msra.mxu0 %v2530_v52 }
 0x626   : > { %5125 = vmatprep.subr.mxu0 %v5542_v0 }
 0x6de   : > { %v2519_v54 = vpop.f32.mrf.mxu0 }
 0x6df   : > { %v5860_v55 = vadd.f32 %v4578_v53, %v2519_v54  ;;  %v4594_v53 = vld [vmem:[%s6066_s6 + $0x2] ss:$0 sm:$0xff] }
 0x6e0   : > { %v5091_v56 = vpop.f32.mrf.mxu0 }
 0x6e1   : > { %2525 = vst.msk [vmem:[#allocation2 + $0x1] sm:$0xff] %vm525_vm0, %v5860_v55 }
 0x6e8   : > { %v2527_v58 = vld [vmem:[#allocation2 + $0x1] sm:$0xff] }
 0x6e9   : > { %v2526_v59 = vld [vmem:[#allocation2] sm:$0xff]  ;;  %5101 = vmatmul.mubr.msk.f32.vlgmr.msra.gmra.mxu1 %vm525_vm0, %v2527_v58 }
 0x6ea   : > { %5112 = vmatmul.mubr.msk.f32.vlgmr.msra.gmra.mxu0 %vm525_vm0, %v2526_v59  ;;  %5115 = vmatpush3.msra.mxu1 %v2689_v57  ;;  %v2528_v2 = vld [vmem:[#allocation2 + $0x2] sm:$0xff] }
 0x6eb   : > { %5122 = vmatprep.mubr.msk.f32.mxu1 %vm5543_vm2, %v5542_v0  ;;  %5116 = vmatprep.subr.mxu1 %v5542_v0 }
 0x6ec   : > { %5133 = vmatprep.mubr.msk.f32.mxu0 %vm5543_vm2, %v5542_v0  ;;  %5117 = vmatpush3.msra.mxu1 %v2688_v60 }
 0x6ed   : > { %5118 = vmatprep.subr.mxu1 %v5542_v0  ;;  %5126 = vmatpush3.msra.mxu0 %v2791_v3 }
 0x6ee   : > { %5119 = vmatpush3.msra.mxu1 %v2687_v61  ;;  %5127 = vmatprep.subr.mxu0 %v5542_v0 }
 0x6ef   : > { %5120 = vmatprep.subr.mxu1 %v5542_v0  ;;  %5128 = vmatpush3.msra.mxu0 %v2790_v5 }
 0x6f0   : > { %5121 = vmatpush3.msra.mxu1 %v2686_v63  ;;  %5129 = vmatprep.subr.mxu0 %v5542_v0  ;;  %v4592_v63 = vld [vmem:[%s6064_s4 + $0x2] ss:$0 sm:$0xff] }
 0x6f1   : > { %5123 = vmatmul.mubr.msk.f32.vlgmr.msra.gmra.mxu1 %vm525_vm0, %v2528_v2  ;;  %5136 = vmatprep.subr.mxu1 %v5542_v0 }
 0x6f2   : > { %5144 = vmatprep.mubr.msk.f32.mxu1 %vm5543_vm2, %v5542_v0  ;;  %5137 = vmatpush3.msra.mxu1 %v2781_v4 }
 0x6f3   : > { %5138 = vmatprep.subr.mxu1 %v5542_v0  ;;  %5130 = vmatpush3.msra.mxu0 %v2789_v6 }
 0x6f4   : > { %5139 = vmatpush3.msra.mxu1 %v2780_v15  ;;  %5131 = vmatprep.subr.mxu0 %v5542_v0 }
 0x6f5   : > { %5140 = vmatprep.subr.mxu1 %v5542_v0  ;;  %5132 = vmatpush3.msra.mxu0 %v2788_v7  ;;  %v3359_v7 = vld [vmem:[#allocation3 + $0x138] sm:$0xff] }
 0x6f6   : > { %5141 = vmatpush3.msra.mxu1 %v2779_v14  ;;  %5147 = vmatprep.subr.mxu0 %v5542_v0  ;;  %v3364_v14 = vld [vmem:[#allocation3 + $0x158] sm:$0xff] }
 0x6f7   : > { %5142 = vmatprep.subr.mxu1 %v5542_v0 }
 0x6f8   : > { %5143 = vmatpush3.msra.mxu1 %v2778_v8  ;;  %v3363_v8 = vld [vmem:[#allocation3 + $0x150] sm:$0xff] }
 0x6f9   : > { %5158 = vmatprep.subr.mxu1 %v5542_v0 }
 0x7a9   : > { %v2608_v9 = vpop.f32.mrf.mxu1 }
 0x7aa   : > { %v2681_v10 = vpop.f32.mrf.mxu0 }
 0x7ab   : > { %v5102_v11 = vpop.f32.mrf.mxu1  ;;  %v2682_v13 = vadd.f32 %v2681_v10, %v2608_v9  ;;  %v3358_v9 = vld [vmem:[#allocation3 + $0x130] sm:$0xff]  ;;  %v3362_v10 = vld [vmem:[#allocation3 + $0x148] sm:$0xff] }
 0x7ac   : > { %v5113_v12 = vpop.f32.mrf.mxu0  ;;  %v3357_v11 = vld [vmem:[#allocation3 + $0x128] sm:$0xff] }
 0x7ad   : > { %v3361_v12 = vld [vmem:[#allocation3 + $0x140] sm:$0xff] }
 0x7b1   : > { %v2759_v16 = vpop.f32.mrf.mxu1 }
 0x7b2   : > { %v2763_v18 = vadd.f32 %v2759_v16, %v2682_v13  ;;  %v3356_v13 = vld [vmem:[#allocation3 + $0x120] sm:$0xff]  ;;  %v4597_v16 = vld [vmem:[%s6068_s8 + $0x2] ss:$0 sm:$0xff] }
 0x7b3   : > { %v5124_v19 = vpop.f32.mrf.mxu1 }
 0x7b4   : > { %v2772_v20 = vadd.f32 %v4584_v17, %v2763_v18 }
 0x7b6   : > { %2773 = vst.msk [vmem:[#allocation2 + $0x1] sm:$0xff] %vm525_vm0, %v2772_v20 }
 0x7bd   : > { %v2775_v23 = vld [vmem:[#allocation2 + $0x1] sm:$0xff] }
 0x7be   : > { %v2774_v24 = vld [vmem:[#allocation2] sm:$0xff]  ;;  %5134 = vmatmul.mubr.msk.f32.vlgmr.msra.gmra.mxu0 %vm525_vm0, %v2775_v23 }
 0x7bf   : > { %5145 = vmatmul.mubr.msk.f32.vlgmr.msra.gmra.mxu1 %vm525_vm0, %v2774_v24  ;;  %5148 = vmatpush3.msra.mxu0 %v2942_v21  ;;  %v2776_v39 = vld [vmem:[#allocation2 + $0x2] sm:$0xff]  ;;  %v3515_v21 = vld [vmem:[#allocation3 + $0x178] sm:$0xff] }
 0x7c0   : > { %5159 = vmatpush3.msra.mxu1 %v2786_v22  ;;  %5149 = vmatprep.subr.mxu0 %v5542_v0 }
 0x7c1   : > { %5160 = vmatprep.subr.mxu1 %v5542_v0  ;;  %5150 = vmatpush3.msra.mxu0 %v2941_v25  ;;  %v3513_v25 = vld [vmem:[#allocation3 + $0x168] sm:$0xff] }
 0x7c2   : > { %5161 = vmatpush3.msra.mxu1 %v2785_v26  ;;  %5151 = vmatprep.subr.mxu0 %v5542_v0 }
 0x7c3   : > { %5162 = vmatprep.subr.mxu1 %v5542_v0  ;;  %5152 = vmatpush3.msra.mxu0 %v2940_v27  ;;  %v3617_v27 = vld [vmem:[#allocation5 + $0x158] sm:$0xff] }
 0x7c4   : > { %5163 = vmatpush3.msra.mxu1 %v2784_v28  ;;  %5153 = vmatprep.subr.mxu0 %v5542_v0  ;;  %v3607_v28 = vld [vmem:[#allocation5 + $0x138] sm:$0xff] }
 0x7c5   : > { %5164 = vmatprep.subr.mxu1 %v5542_v0  ;;  %5154 = vmatpush3.msra.mxu0 %v2939_v29  ;;  %v3616_v29 = vld [vmem:[#allocation5 + $0x150] sm:$0xff] }
 0x7c6   : > { %5155 = vmatprep.mubr.msk.f32.mxu0 %vm5543_vm2, %v5542_v0  ;;  %5165 = vmatpush3.msra.mxu1 %v2783_v30  ;;  %v3606_v30 = vld [vmem:[#allocation5 + $0x130] sm:$0xff] }
 0x7c7   : > { %5166 = vmatprep.mubr.msk.f32.mxu1 %vm5543_vm2, %v5542_v0  ;;  %5156 = vmatmul.mubr.msk.f32.vlgmr.msra.gmra.mxu0 %vm525_vm0, %v2775_v23 }
 0x7c8   : > { %5167 = vmatmul.mubr.msk.f32.vlgmr.msra.gmra.mxu1 %vm525_vm0, %v2774_v24  ;;  %5169 = vmatprep.subr.mxu0 %v5542_v0  ;;  %v3514_v24 = vld [vmem:[#allocation3 + $0x170] sm:$0xff] }
 0x7c9   : > { %5180 = vmatprep.subr.mxu1 %v5542_v0  ;;  %5170 = vmatpush3.msra.mxu0 %v3087_v31  ;;  %v3615_v31 = vld [vmem:[#allocation5 + $0x148] sm:$0xff] }
 0x7ca   : > { %5181 = vmatpush3.msra.mxu1 %v3166_v32  ;;  %5171 = vmatprep.subr.mxu0 %v5542_v0  ;;  %v3605_v32 = vld [vmem:[#allocation5 + $0x128] sm:$0xff] }
 0x7cb   : > { %5182 = vmatprep.subr.mxu1 %v5542_v0  ;;  %5172 = vmatpush3.msra.mxu0 %v3086_v33  ;;  %v3614_v33 = vld [vmem:[#allocation5 + $0x140] sm:$0xff] }
 0x7cc   : > { %5183 = vmatpush3.msra.mxu1 %v3165_v34  ;;  %5173 = vmatprep.subr.mxu0 %v5542_v0  ;;  %v3604_v34 = vld [vmem:[#allocation5 + $0x120] sm:$0xff] }
 0x7cd   : > { %5184 = vmatprep.subr.mxu1 %v5542_v0  ;;  %5174 = vmatpush3.msra.mxu0 %v3085_v35 }
 0x7ce   : > { %5185 = vmatpush3.msra.mxu1 %v3164_v36  ;;  %5175 = vmatprep.subr.mxu0 %v5542_v0 }
 0x7cf   : > { %5186 = vmatprep.subr.mxu1 %v5542_v0  ;;  %5176 = vmatpush3.msra.mxu0 %v3084_v37 }
 0x7d0   : > { %5177 = vmatprep.mubr.msk.f32.mxu0 %vm5543_vm2, %v5542_v0  ;;  %5187 = vmatpush3.msra.mxu1 %v3163_v38 }
 0x7d1   : > { %5188 = vmatprep.mubr.msk.f32.mxu1 %vm5543_vm2, %v5542_v0  ;;  %5178 = vmatmul.mubr.msk.f32.vlgmr.msra.gmra.mxu0 %vm525_vm0, %v2776_v39 }
 0x7d2   : > { %5189 = vmatmul.mubr.msk.f32.vlgmr.msra.gmra.mxu1 %vm525_vm0, %v2776_v39  ;;  %5191 = vmatprep.subr.mxu0 %v5542_v0 }
 0x7d3   : > { %5199 = vmatprep.mubr.msk.f32.mxu0 %vm5543_vm2, %v5542_v0  ;;  %5202 = vmatprep.subr.mxu1 %v5542_v0 }
 0x7d4   : > { %5210 = vmatprep.mubr.msk.f32.mxu1 %vm5543_vm2, %v5542_v0  ;;  %5192 = vmatpush3.msra.mxu0 %v3268_v40 }
 0x7d5   : > { %5193 = vmatprep.subr.mxu0 %v5542_v0  ;;  %5203 = vmatpush3.msra.mxu1 %v3364_v14 }
 0x7d6   : > { %5194 = vmatpush3.msra.mxu0 %v3267_v41  ;;  %5204 = vmatprep.subr.mxu1 %v5542_v0  ;;  %v4603_v41 = vld [vmem:[%s6062_s2 + $0x3] ss:$0 sm:$0xff] }
 0x7d7   : > { %5195 = vmatprep.subr.mxu0 %v5542_v0  ;;  %5205 = vmatpush3.msra.mxu1 %v3363_v8 }
 0x7d8   : > { %5196 = vmatpush3.msra.mxu0 %v3266_v42  ;;  %5206 = vmatprep.subr.mxu1 %v5542_v0 }
 0x7d9   : > { %5197 = vmatprep.subr.mxu0 %v5542_v0  ;;  %5207 = vmatpush3.msra.mxu1 %v3362_v10 }
 0x7da   : > { %5198 = vmatpush3.msra.mxu0 %v3265_v43  ;;  %5208 = vmatprep.subr.mxu1 %v5542_v0 }
 0x7db   : > { %5213 = vmatprep.subr.mxu0 %v5542_v0  ;;  %5209 = vmatpush3.msra.mxu1 %v3361_v12 }
 0x7dc   : > { %5224 = vmatprep.subr.mxu1 %v5542_v0 }
 0x87e   : > { %v2861_v44 = vpop.f32.mrf.mxu0 }
 0x87f   : > { %v2934_v45 = vpop.f32.mrf.mxu1 }
 0x880   : > { %v5135_v46 = vpop.f32.mrf.mxu0  ;;  %v2935_v60 = vadd.f32 %v2934_v45, %v2861_v44  ;;  %v3768_v45 = vld [vmem:[#allocation7 + $0x158] sm:$0xff] }
 0x881   : > { %v5146_v47 = vpop.f32.mrf.mxu1  ;;  %v3612_v46 = vld [vmem:[#allocation7 + $0x138] sm:$0xff] }
 0x887   : > { %v3009_v48 = vpop.f32.mrf.mxu0 }
 0x888   : > { %v3079_v49 = vpop.f32.mrf.mxu1 }
 0x889   : > { %v5157_v62 = vpop.f32.mrf.mxu0  ;;  %v3080_v50 = vadd.f32 %v3079_v49, %v3009_v48  ;;  %v3767_v49 = vld [vmem:[#allocation7 + $0x150] sm:$0xff] }
 0x88a   : > { %v5168_v1 = vpop.f32.mrf.mxu1  ;;  %v3611_v62 = vld [vmem:[#allocation7 + $0x130] sm:$0xff] }
 0x88b   : > { %v3766_v1 = vld [vmem:[#allocation7 + $0x148] sm:$0xff] }
 0x891   : > { %v3157_v51 = vpop.f32.mrf.mxu0 }
 0x892   : > { %v3233_v52 = vpop.f32.mrf.mxu1  ;;  %v3161_v61 = vadd.f32 %v3157_v51, %v2935_v60  ;;  %v3765_v51 = vld [vmem:[#allocation7 + $0x140] sm:$0xff] }
 0x893   : > { %v3237_v54 = vadd.f32 %v3233_v52, %v3080_v50  ;;  %v5179_v56 = vpop.f32.mrf.mxu0  ;;  %v3610_v50 = vld [vmem:[#allocation7 + $0x128] sm:$0xff]  ;;  %v3609_v52 = vld [vmem:[#allocation7 + $0x120] sm:$0xff] }
 0x894   : > { %v5190_v57 = vpop.f32.mrf.mxu1  ;;  %v3246_v2 = vadd.f32 %v4592_v63, %v3161_v61  ;;  %v3912_v56 = vld [vmem:[#allocation5 + $0x170] sm:$0xff]  ;;  %v3910_v60 = vld [vmem:[#allocation5 + $0x160] sm:$0xff] }
 0x895   : > { %v3256_v58 = vadd.f32 %v4594_v53, %v3237_v54  ;;  %v3913_v53 = vld [vmem:[#allocation5 + $0x178] sm:$0xff]  ;;  %v3991_v57 = vld [vmem:[#allocation7 + $0x170] sm:$0xff]  ;;  %v3989_v61 = vld [vmem:[#allocation7 + $0x160] sm:$0xff] }
 0x896   : > { %v3992_v54 = vld [vmem:[#allocation7 + $0x178] sm:$0xff] }
 0x897   : > { %v4595_v59 = vmul.f32 -1.442695, %v3256_v58  ;;  %v3911_v58 = vld [vmem:[#allocation5 + $0x168] sm:$0xff] }
 0x899   : > { %5400 = vpow2.f32 %v4595_v59  ;;  %v3990_v59 = vld [vmem:[#allocation7 + $0x168] sm:$0xff] }
 0x89a   : > { %5402 = vtanh.f32 %v3246_v2  ;;  %v4094_v2 = vld [vmem:[#allocation8 + $0x78] sm:$0xff] }
 0x8a6   : > { %v5401_v3 = vpop.eup %5400 }
 0x8a7   : > { %v3260_v4 = vadd.f32 1.0, %v5401_v3  ;;  %v5403_v5 = vpop.eup %5402  ;;  %v4093_v3 = vld [vmem:[#allocation8 + $0x70] sm:$0xff] }
 0x8a9   : > { %5404 = vrcp.f32 %v3260_v4  ;;  %v4092_v4 = vld [vmem:[#allocation8 + $0x68] sm:$0xff] }
 0x8b6   : > { %v5405_v15 = vpop.eup %5404 }
 0x8b7   : > { %v3263_v6 = vmul.f32 %v5405_v15, %v5403_v5  ;;  %v4091_v5 = vld [vmem:[#allocation8 + $0x60] sm:$0xff] }
 0x8b9   : > { %5200 = vmatmul.mubr.msk.f32.vlgmr.msra.gmra.mxu0 %vm525_vm0, %v3263_v6 }
 0x8ba   : > { %5221 = vmatprep.mubr.msk.f32.mxu0 %vm5543_vm2, %v5542_v0  ;;  %5214 = vmatpush3.msra.mxu0 %v3359_v7 }
 0x8bb   : > { %5215 = vmatprep.subr.mxu0 %v5542_v0 }
 0x8bc   : > { %5216 = vmatpush3.msra.mxu0 %v3358_v9 }
 0x8bd   : > { %5217 = vmatprep.subr.mxu0 %v5542_v0 }
 0x8be   : > { %5218 = vmatpush3.msra.mxu0 %v3357_v11 }
 0x8bf   : > { %5219 = vmatprep.subr.mxu0 %v5542_v0 }
 0x8c0   : > { %5220 = vmatpush3.msra.mxu0 %v3356_v13 }
 0x8c1   : > { %5235 = vmatprep.subr.mxu0 %v5542_v0 }
 0x979   : > { %v3346_v17 = vpop.f32.mrf.mxu0 }
 0x97a   : > { %v3347_v18 = vadd.f32 %v4597_v16, %v3346_v17  ;;  %v4613_v17 = vld [vmem:[%s6066_s6 + $0x3] ss:$0 sm:$0xff] }
 0x97b   : > { %v5201_v19 = vpop.f32.mrf.mxu0 }
 0x97c   : > { %v5948_v20 = vadd.f32 %v3347_v18, %v5860_v55  ;;  %v3512_v55 = vld [vmem:[#allocation3 + $0x160] sm:$0xff] }
 0x97e   : > { %3351 = vst.msk [vmem:[#allocation2 + $0x1] sm:$0xff] %vm525_vm0, %v5948_v20 }
 0x985   : > { %v3353_v22 = vld [vmem:[#allocation2 + $0x1] sm:$0xff] }
 0x986   : > { %v3352_v23 = vld [vmem:[#allocation2] sm:$0xff]  ;;  %5211 = vmatmul.mubr.msk.f32.vlgmr.msra.gmra.mxu1 %vm525_vm0, %v3353_v22 }
 0x987   : > { %5222 = vmatmul.mubr.msk.f32.vlgmr.msra.gmra.mxu0 %vm525_vm0, %v3352_v23  ;;  %5225 = vmatpush3.msra.mxu1 %v3515_v21  ;;  %v3354_v26 = vld [vmem:[#allocation2 + $0x2] sm:$0xff] }
 0x988   : > { %5232 = vmatprep.mubr.msk.f32.mxu1 %vm5543_vm2, %v5542_v0  ;;  %5226 = vmatprep.subr.mxu1 %v5542_v0 }
 0x989   : > { %5243 = vmatprep.mubr.msk.f32.mxu0 %vm5543_vm2, %v5542_v0  ;;  %5227 = vmatpush3.msra.mxu1 %v3514_v24 }
 0x98a   : > { %5228 = vmatprep.subr.mxu1 %v5542_v0  ;;  %5236 = vmatpush3.msra.mxu0 %v3617_v27 }
 0x98b   : > { %5229 = vmatpush3.msra.mxu1 %v3513_v25  ;;  %5237 = vmatprep.subr.mxu0 %v5542_v0 }
 0x98c   : > { %5230 = vmatprep.subr.mxu1 %v5542_v0  ;;  %5238 = vmatpush3.msra.mxu0 %v3616_v29 }
 0x98d   : > { %5231 = vmatpush3.msra.mxu1 %v3512_v55  ;;  %5239 = vmatprep.subr.mxu0 %v5542_v0  ;;  %v4611_v55 = vld [vmem:[%s6064_s4 + $0x3] ss:$0 sm:$0xff] }
 0x98e   : > { %5233 = vmatmul.mubr.msk.f32.vlgmr.msra.gmra.mxu1 %vm525_vm0, %v3354_v26  ;;  %5246 = vmatprep.subr.mxu1 %v5542_v0 }
 0x98f   : > { %5254 = vmatprep.mubr.msk.f32.mxu1 %vm5543_vm2, %v5542_v0  ;;  %5247 = vmatpush3.msra.mxu1 %v3607_v28 }
 0x990   : > { %5248 = vmatprep.subr.mxu1 %v5542_v0  ;;  %5240 = vmatpush3.msra.mxu0 %v3615_v31 }
 0x991   : > { %5249 = vmatpush3.msra.mxu1 %v3606_v30  ;;  %5241 = vmatprep.subr.mxu0 %v5542_v0 }
 0x992   : > { %5250 = vmatprep.subr.mxu1 %v5542_v0  ;;  %5242 = vmatpush3.msra.mxu0 %v3614_v33  ;;  %v4620_v33 = vld [vmem:[%s6069_s9 + $0x30] sm:$0xff] }
 0x993   : > { %5251 = vmatpush3.msra.mxu1 %v3605_v32  ;;  %5257 = vmatprep.subr.mxu0 %v5542_v0  ;;  %v4621_v32 = vld [vmem:[%s6069_s9 + $0x38] sm:$0xff] }
 0x994   : > { %5252 = vmatprep.subr.mxu1 %v5542_v0 }
 0x995   : > { %5253 = vmatpush3.msra.mxu1 %v3604_v34  ;;  %v4619_v34 = vld [vmem:[%s6069_s9 + $0x28] sm:$0xff] }
 0x996   : > { %5268 = vmatprep.subr.mxu1 %v5542_v0 }
 0xa46   : > { %v3434_v35 = vpop.f32.mrf.mxu1 }
 0xa47   : > { %v3507_v36 = vpop.f32.mrf.mxu0 }
 0xa48   : > { %v5212_v37 = vpop.f32.mrf.mxu1  ;;  %v3508_v39 = vadd.f32 %v3507_v36, %v3434_v35  ;;  %v4618_v35 = vld [vmem:[%s6069_s9 + $0x20] sm:$0xff] }
 0xa49   : > { %v5223_v38 = vpop.f32.mrf.mxu0  ;;  %v4616_v36 = vld [vmem:[%s6068_s8 + $0x3] ss:$0 sm:$0xff] }
 0xa4e   : > { %v3585_v40 = vpop.f32.mrf.mxu1 }
 0xa4f   : > { %v3589_v42 = vadd.f32 %v3585_v40, %v3508_v39 }
 0xa50   : > { %v5234_v43 = vpop.f32.mrf.mxu1 }
 0xa51   : > { %v3598_v44 = vadd.f32 %v4603_v41, %v3589_v42 }
 0xa53   : > { %3599 = vst.msk [vmem:[#allocation2 + $0x1] sm:$0xff] %vm525_vm0, %v3598_v44 }
 0xa5a   : > { %v3601_v47 = vld [vmem:[#allocation2 + $0x1] sm:$0xff] }
 0xa5b   : > { %v3600_v48 = vld [vmem:[#allocation2] sm:$0xff]  ;;  %5244 = vmatmul.mubr.msk.f32.vlgmr.msra.gmra.mxu0 %vm525_vm0, %v3601_v47 }
 0xa5c   : > { %5255 = vmatmul.mubr.msk.f32.vlgmr.msra.gmra.mxu1 %vm525_vm0, %v3600_v48  ;;  %5258 = vmatpush3.msra.mxu0 %v3768_v45  ;;  %v3602_v63 = vld [vmem:[#allocation2 + $0x2] sm:$0xff]  ;;  %v4623_v45 = vld [vmem:[%s6070_s10 + $0x1] ss:$0 sm:$0xff] }
 0xa5d   : > { %5269 = vmatpush3.msra.mxu1 %v3612_v46  ;;  %5259 = vmatprep.subr.mxu0 %v5542_v0 }
 0xa5e   : > { %5270 = vmatprep.subr.mxu1 %v5542_v0  ;;  %5260 = vmatpush3.msra.mxu0 %v3767_v49 }
 0xa5f   : > { %5271 = vmatpush3.msra.mxu1 %v3611_v62  ;;  %5261 = vmatprep.subr.mxu0 %v5542_v0 }
 0xa60   : > { %5272 = vmatprep.subr.mxu1 %v5542_v0  ;;  %5262 = vmatpush3.msra.mxu0 %v3766_v1 }
 0xa61   : > { %5273 = vmatpush3.msra.mxu1 %v3610_v50  ;;  %5263 = vmatprep.subr.mxu0 %v5542_v0 }
 0xa62   : > { %5274 = vmatprep.subr.mxu1 %v5542_v0  ;;  %5264 = vmatpush3.msra.mxu0 %v3765_v51 }
 0xa63   : > { %5265 = vmatprep.mubr.msk.f32.mxu0 %vm5543_vm2, %v5542_v0  ;;  %5275 = vmatpush3.msra.mxu1 %v3609_v52 }
 0xa64   : > { %5276 = vmatprep.mubr.msk.f32.mxu1 %vm5543_vm2, %v5542_v0  ;;  %5266 = vmatmul.mubr.msk.f32.vlgmr.msra.gmra.mxu0 %vm525_vm0, %v3601_v47 }
 0xa65   : > { %5277 = vmatmul.mubr.msk.f32.vlgmr.msra.gmra.mxu1 %vm525_vm0, %v3600_v48  ;;  %5279 = vmatprep.subr.mxu0 %v5542_v0 }
 0xa66   : > { %5290 = vmatprep.subr.mxu1 %v5542_v0  ;;  %5280 = vmatpush3.msra.mxu0 %v3913_v53 }
 0xa67   : > { %5291 = vmatpush3.msra.mxu1 %v3992_v54  ;;  %5281 = vmatprep.subr.mxu0 %v5542_v0 }
 0xa68   : > { %5292 = vmatprep.subr.mxu1 %v5542_v0  ;;  %5282 = vmatpush3.msra.mxu0 %v3912_v56 }
 0xa69   : > { %5293 = vmatpush3.msra.mxu1 %v3991_v57  ;;  %5283 = vmatprep.subr.mxu0 %v5542_v0 }
 0xa6a   : > { %5294 = vmatprep.subr.mxu1 %v5542_v0  ;;  %5284 = vmatpush3.msra.mxu0 %v3911_v58 }
 0xa6b   : > { %5295 = vmatpush3.msra.mxu1 %v3990_v59  ;;  %5285 = vmatprep.subr.mxu0 %v5542_v0 }
 0xa6c   : > { %5296 = vmatprep.subr.mxu1 %v5542_v0  ;;  %5286 = vmatpush3.msra.mxu0 %v3910_v60 }
 0xa6d   : > { %5287 = vmatprep.mubr.msk.f32.mxu0 %vm5543_vm2, %v5542_v0  ;;  %5297 = vmatpush3.msra.mxu1 %v3989_v61 }
 0xa6e   : > { %5298 = vmatprep.mubr.msk.f32.mxu1 %vm5543_vm2, %v5542_v0  ;;  %5288 = vmatmul.mubr.msk.f32.vlgmr.msra.gmra.mxu0 %vm525_vm0, %v3602_v63 }
 0xa6f   : > { %5299 = vmatmul.mubr.msk.f32.vlgmr.msra.gmra.mxu1 %vm525_vm0, %v3602_v63  ;;  %5301 = vmatprep.subr.mxu0 %v5542_v0 }
 0xa70   : > { %5309 = vmatprep.mubr.msk.f32.mxu0 %vm5543_vm2, %v5542_v0  ;;  %5312 = vmatprep.subr.mxu1 %v5542_v0 }
 0xa71   : > { %5320 = vmatprep.mubr.msk.f32.mxu1 %vm5543_vm2, %v5542_v0  ;;  %5302 = vmatpush3.msra.mxu0 %v4094_v2 }
 0xa72   : > { %5303 = vmatprep.subr.mxu0 %v5542_v0  ;;  %5313 = vmatpush3.msra.mxu1 %v4621_v32 }
 0xa73   : > { %5304 = vmatpush3.msra.mxu0 %v4093_v3  ;;  %5314 = vmatprep.subr.mxu1 %v5542_v0 }
 0xa74   : > { %5305 = vmatprep.subr.mxu0 %v5542_v0  ;;  %5315 = vmatpush3.msra.mxu1 %v4620_v33 }
 0xa75   : > { %5306 = vmatpush3.msra.mxu0 %v4092_v4  ;;  %5316 = vmatprep.subr.mxu1 %v5542_v0 }
 0xa76   : > { %5307 = vmatprep.subr.mxu0 %v5542_v0  ;;  %5317 = vmatpush3.msra.mxu1 %v4619_v34 }
 0xa77   : > { %5308 = vmatpush3.msra.mxu0 %v4091_v5  ;;  %5318 = vmatprep.subr.mxu1 %v5542_v0  ;;  %v2414_v0 = vpop.trf.xlu1 }
 0xa78   : > { %5319 = vmatpush3.msra.mxu1 %v4618_v35  ;;  %2431 = vst.msk [vmem:[%s514_s18] sm:$0xff] %vm2430_vm4, %v2414_v0 }
 0xa7b   : > { %v2415_v42 = vpop.trf.xlu1 }
 0xa7c   : > { %2432 = vst.msk [vmem:[%s514_s18 + $0x8] sm:$0xff] %vm2430_vm4, %v2415_v42 }
 0xa7f   : > { %v2416_v43 = vpop.trf.xlu1 }
 0xa80   : > { %2433 = vst.msk [vmem:[%s514_s18 + $0x10] sm:$0xff] %vm2430_vm4, %v2416_v43 }
 0xa83   : > { %v2417_v44 = vpop.trf.xlu1 }
 0xa84   : > { %2434 = vst.msk [vmem:[%s514_s18 + $0x18] sm:$0xff] %vm2430_vm4, %v2417_v44 }
 0xb1b   : > { %v3687_v15 = vpop.f32.mrf.mxu0 }
 0xb1c   : > { %v3760_v6 = vpop.f32.mrf.mxu1 }
 0xb1d   : > { %v5245_v14 = vpop.f32.mrf.mxu0  ;;  %v3761_v24 = vadd.f32 %v3760_v6, %v3687_v15 }
 0xb1e   : > { %v5256_v7 = vpop.f32.mrf.mxu1 }
 0xb24   : > { %v3835_v8 = vpop.f32.mrf.mxu0 }
 0xb25   : > { %v3905_v9 = vpop.f32.mrf.mxu1 }
 0xb26   : > { %v5267_v10 = vpop.f32.mrf.mxu0  ;;  %v3906_v12 = vadd.f32 %v3905_v9, %v3835_v8 }
 0xb27   : > { %v5278_v11 = vpop.f32.mrf.mxu1 }
 0xb2e   : > { %v3983_v13 = vpop.f32.mrf.mxu0 }
 0xb2f   : > { %v4059_v16 = vpop.f32.mrf.mxu1  ;;  %v3987_v25 = vadd.f32 %v3983_v13, %v3761_v24 }
 0xb30   : > { %v4063_v18 = vadd.f32 %v4059_v16, %v3906_v12  ;;  %v5289_v19 = vpop.f32.mrf.mxu0 }
 0xb31   : > { %v5300_v21 = vpop.f32.mrf.mxu1  ;;  %v4072_v26 = vadd.f32 %v4611_v55, %v3987_v25 }
 0xb32   : > { %v4082_v22 = vadd.f32 %v4613_v17, %v4063_v18 }
 0xb34   : > { %v4614_v23 = vmul.f32 -1.442695, %v4082_v22 }
 0xb36   : > { %5406 = vpow2.f32 %v4614_v23 }
 0xb37   : > { %5408 = vtanh.f32 %v4072_v26 }
 0xb43   : > { %v5407_v27 = vpop.eup %5406 }
 0xb44   : > { %v4086_v28 = vadd.f32 1.0, %v5407_v27  ;;  %v5409_v29 = vpop.eup %5408 }
 0xb46   : > { %5410 = vrcp.f32 %v4086_v28 }
 0xb53   : > { %v5411_v30 = vpop.eup %5410 }
 0xb54   : > { %v4089_v31 = vmul.f32 %v5411_v30, %v5409_v29 }
 0xb56   : > { %5310 = vmatmul.mubr.msk.f32.vlgmr.msra.gmra.mxu0 %vm525_vm0, %v4089_v31 }
 0xc16   : > { %v4172_v37 = vpop.f32.mrf.mxu0 }
 0xc17   : > { %v4173_v38 = vadd.f32 %v4616_v36, %v4172_v37 }
 0xc18   : > { %v5311_v39 = vpop.f32.mrf.mxu0 }
 0xc19   : > { %v4176_v40 = vadd.f32 %v4173_v38, %v5948_v20 }
 0xc1b   : > { %4177 = vxpose.xlu1.b32.start.end [1/1] (short) (narrow) %v4176_v40, 32  ;;  %4214 = vst.msk [vmem:[#allocation2 + $0x1] sm:$0xff] %vm525_vm0, %v4176_v40 }
 0xc22   : > { %v4215_v41 = vld [vmem:[#allocation2 + $0x1] ss:$2 sm:$0xf] }
 0xc23   : > { %5321 = vmatmul.mubr.msk.f32.vlgmr.msra.gmra.mxu1 %vm525_vm0, %v4215_v41 }
 0xc97   : > { %v4193_v20 = vpop.trf.xlu1 }
 0xc98   : > { %4210 = vst.msk [vmem:[%s519_s23] sm:$0xff] %vm4209_vm5, %v4193_v20 }
 0xc9b   : > { %v4194_v47 = vpop.trf.xlu1 }
 0xc9c   : > { %4211 = vst.msk [vmem:[%s519_s23 + $0x8] sm:$0xff] %vm4209_vm5, %v4194_v47 }
 0xc9f   : > { %v4195_v62 = vpop.trf.xlu1 }
 0xca0   : > { %4212 = vst.msk [vmem:[%s519_s23 + $0x10] sm:$0xff] %vm4209_vm5, %v4195_v62 }
 0xca3   : > { %v4196_v1 = vpop.trf.xlu1 }
 0xca4   : > { %4213 = vst.msk [vmem:[%s519_s23 + $0x18] sm:$0xff] %vm4209_vm5, %v4196_v1 }
 0xce3   : > { %v4298_v46 = vpop.f32.mrf.mxu1 }
 0xce4   : > { %v4299_v48 = vadd.f32 %v4623_v45, %v4298_v46 }
 0xce5   : > { %v5322_v49 = vpop.f32.mrf.mxu1 }
 0xce6   : > { %4302 = vxpose.xlu0.b32.start.end [1/1] (short) (narrow) %v4299_v48, 32 }
 0xd62   : > { %v4318_v50 = vpop.trf.xlu0 }
 0xd63   : > { %4335 = vst.msk [vmem:[%s524_s26] sm:$0xff] %vm4334_vm6, %v4318_v50 }
 0xd66   : > { %v4319_v51 = vpop.trf.xlu0 }
 0xd67   : > { %4336 = vst.msk [vmem:[%s524_s26 + $0x8] sm:$0xff] %vm4334_vm6, %v4319_v51 }
 0xd6a   : > { %v4320_v52 = vpop.trf.xlu0 }
 0xd6b   : > { %4337 = vst.msk [vmem:[%s524_s26 + $0x10] sm:$0xff] %vm4334_vm6, %v4320_v52 }
 0xd6e   : > { %v4321_v53 = vpop.trf.xlu0 }
 0xd6f   : > { %4338 = vst.msk [vmem:[%s524_s26 + $0x18] sm:$0xff] %vm4334_vm6, %v4321_v53 }
 0xd70 PF: > { %s27_s25 = sadd.s32 1, %s5534_s25  }
 0xd71   : > { %p24_p2 = scmp.ge.s32.totalorder %s27_s25, 4  }
 0xd73   :  { %26 = sbr.rel (!%p24_p2) target bundleno = 3 (0x3), region = 186 }
 0xd78   :  { %4392 = vsyncpa [#allocation4], 1 }
 0xd79   :  { %4394 = vsyncpa [#allocation4 + $0x1], 1 }
 0xd7a   :  { %4395 = vsyncpa [#allocation6], 1 }
 0xd7b   :  { %4396 = vsyncpa [#allocation9], 1 }

</bundles_post_ra>
